<compile_context>
chip_gen: v6e
topology: v6e:2x2x1
jax: 0.10.0
libtpu: 0.0.40
codegen_flags: <defaults>
</compile_context>

<pallas_src>
import functools

import jax
import jax.numpy as jnp
from jax import lax
from jax.experimental import pallas as pl
from jax.experimental.pallas import tpu as pltpu


def _round_up(x, m):
    return ((x + m - 1) // m) * m


# ----------------------------------------------------------------------------
# Fused kernel: dist2 (once) -> PEGConv1 -> PEGConv2 -> link-prediction head
# ----------------------------------------------------------------------------
def _net_fused_kernel(edge_mlp_dim,
                      pos_ref, feats_ref, adj_ref,
                      w1a_ref, b1a_ref, w2a_ref, b2a_ref, wlin1_ref, blin1_ref,
                      w1b_ref, b1b_ref, w2b_ref, b2b_ref, wlin2_ref, blin2_ref,
                      wfc_ref, bfc_ref, idxf_ref, idxs_ref,
                      out_ref):
    f32 = jnp.float32
    bf16 = jnp.bfloat16

    pos = pos_ref[...]                       # [N, P]  positional encodings
    feats = feats_ref[...]                   # [N, F]  node features
    adj = adj_ref[...]                       # [N, N]  0/1 mask, (dst, src)

    # ---- pairwise squared distances, computed once and shared by both convs.
    # Gram matrix via dot_general contracting the LAST axes of both operands
    # (no explicit .T), bf16 operands, f32 accumulation on the MXU.
    pos_bf = pos.astype(bf16)
    gram = lax.dot_general(pos_bf, pos_bf, (((1,), (1,)), ((), ())),
                           preferred_element_type=f32)            # [N, N]
    sq = jnp.sum(pos * pos, axis=-1, keepdims=True)               # [N, 1]
    # (N,1)->(1,N) relayout of a single column: tiny, kept for robust lowering.
    dist2 = jnp.maximum(sq + jnp.transpose(sq) - 2.0 * gram, 0.0)  # [N, N]

    def peg_conv(feats_in, w1, b1, w2, b2, wlin_ref, blin_ref):
        # edge MLP  Linear(1,E) -> ReLU -> Linear(E,1) -> Sigmoid, unrolled.
        # Accumulator starts from the k=0 term (no zeros init); elementwise
        # math stays f32.
        acc = jnp.maximum(dist2 * w1[0] + b1[0], 0.0) * w2[0]
        for k in range(1, edge_mlp_dim):
            acc = acc + jnp.maximum(dist2 * w1[k] + b1[k], 0.0) * w2[k]
        # fuse the adjacency mask directly into the gate -> weighted adjacency
        wadj = adj * jax.nn.sigmoid(acc + b2[0])                   # [N, N]
        # masked weighted sum-aggregation + node Linear on the MXU (bf16/f32)
        agg = jnp.dot(wadj.astype(bf16), feats_in.astype(bf16),
                      preferred_element_type=f32)                  # [N, Fin]
        return (jnp.dot(agg.astype(bf16), wlin_ref[...].astype(bf16),
                        preferred_element_type=f32)
                + blin_ref[...])                                   # [N, H]

    feats1 = peg_conv(feats, w1a_ref, b1a_ref, w2a_ref, b2a_ref,
                      wlin1_ref, blin1_ref)
    feats2 = peg_conv(feats1, w1b_ref, b1b_ref, w2b_ref, b2b_ref,
                      wlin2_ref, blin2_ref)

    # ---- link-prediction head (fused).  Endpoint gather as exact one-hot
    # matmuls on the MXU (standard orientation), reductions over the feature
    # (lane) axis, final store lane-dense as (1, M_pad).
    n = pos.shape[0]
    m_pad = out_ref.shape[1]
    col_ids = lax.broadcasted_iota(jnp.int32, (m_pad, n), 1)       # [Mp, N]
    sel_f = (col_ids == idxf_ref[...]).astype(f32)                 # [Mp, N]
    sel_s = (col_ids == idxs_ref[...]).astype(f32)                 # [Mp, N]

    pos_f = jnp.dot(sel_f, pos, preferred_element_type=f32)        # [Mp, P]
    pos_s = jnp.dot(sel_s, pos, preferred_element_type=f32)        # [Mp, P]
    nod_f = jnp.dot(sel_f, feats2, preferred_element_type=f32)     # [Mp, H]
    nod_s = jnp.dot(sel_s, feats2, preferred_element_type=f32)     # [Mp, H]

    d = pos_f - pos_s
    pe = jnp.sum(d * d, axis=-1, keepdims=True)                    # [Mp, 1]
    pred = jnp.sum(nod_f * nod_s, axis=-1, keepdims=True)          # [Mp, 1]

    # nn.Linear(2, 1): logits = w[0]*pred + w[1]*pe + b
    logits = pred * wfc_ref[0] + pe * wfc_ref[1] + bfc_ref[0]      # [Mp, 1]
    out_ref[...] = jnp.transpose(logits)                           # [1, Mp]


# ----------------------------------------------------------------------------
# Wrapper: one pallas_call for the whole forward pass
# ----------------------------------------------------------------------------
def net_forward(params, pos, feats, edge_index, idx):
    """pos: [N, P], feats: [N, F] (reference x = concat([pos, feats], -1))."""
    n = pos.shape[0]
    m = idx.shape[1]
    m_pad = max(128, _round_up(m, 128))      # lane-dense link axis

    # glue: dense 0/1 adjacency (dst, src) from edge_index (scatter).
    # NOTE: duplicate edges collapse to 1 (set, not add) -> 0/1 mask semantics.
    src, dst = edge_index[0], edge_index[1]
    adj = jnp.zeros((n, n), jnp.float32).at[dst, src].set(1.0)

    # glue: padded query indices as int32 columns (padded pairs -> (0, 0),
    # computed harmlessly and sliced off below).
    idx_f = jnp.zeros((m_pad, 1), jnp.int32).at[:m, 0].set(idx[0])
    idx_s = jnp.zeros((m_pad, 1), jnp.int32).at[:m, 0].set(idx[1])

    vmem = pl.BlockSpec(memory_space=pltpu.MemorySpace.VMEM)
    smem = pl.BlockSpec(memory_space=pltpu.MemorySpace.SMEM)

    c1, c2 = params["conv1"], params["conv2"]
    edge_mlp_dim = c1["w1"].shape[0]
    kernel = functools.partial(_net_fused_kernel, edge_mlp_dim)

    out = pl.pallas_call(
        kernel,
        out_shape=jax.ShapeDtypeStruct((1, m_pad), jnp.float32),
        in_specs=[vmem, vmem, vmem,                      # pos, feats, adj
                  smem, smem, smem, smem, vmem, vmem,    # conv1 params
                  smem, smem, smem, smem, vmem, vmem,    # conv2 params
                  smem, smem,                            # fc params
                  vmem, vmem],                           # link indices
        out_specs=vmem,
        compiler_params=pltpu.CompilerParams(
            # raise the scoped-VMEM limit above the 16/32 MiB defaults
            # (safe on all of v5e/v6e/v7x)
            vmem_limit_bytes=64 * 1024 * 1024),
    )(pos, feats, adj,
      c1["w1"], c1["b1"], c1["w2"], c1["b2"], c1["w_lin"], c1["b_lin"],
      c2["w1"], c2["b1"], c2["w2"], c2["b2"], c2["w_lin"], c2["b_lin"],
      params["fc_w"], params["fc_b"], idx_f, idx_s)

    # back to the PyTorch output shape [M, 1]
    return out[0, :m].reshape(m, 1)


# ----------------------------------------------------------------------------
# Deterministic parameter init (synthetic — no checkpoint loading)
# ----------------------------------------------------------------------------
def init_params(key, in_feats_dim, pos_dim, hidden_dim, edge_mlp_dim=8):
    del pos_dim  # positions pass through PEGConv unchanged

    def conv_params(k, fin, fout):
        ks = jax.random.split(k, 6)
        return dict(
            w1=0.5 * jax.random.normal(ks[0], (edge_mlp_dim,), jnp.float32),
            b1=0.1 * jax.random.normal(ks[1], (edge_mlp_dim,), jnp.float32),
            w2=0.5 * jax.random.normal(ks[2], (edge_mlp_dim,), jnp.float32),
            b2=0.1 * jax.random.normal(ks[3], (1,), jnp.float32),
            w_lin=(1.0 / jnp.sqrt(fin))
                  * jax.random.normal(ks[4], (fin, fout), jnp.float32),
            b_lin=0.1 * jax.random.normal(ks[5], (1, fout), jnp.float32),
        )

    k1, k2, k3, k4 = jax.random.split(key, 4)
    return dict(
        conv1=conv_params(k1, in_feats_dim, hidden_dim),
        conv2=conv_params(k2, hidden_dim, hidden_dim),  # stacking needs F_in == hidden
        fc_w=jax.random.normal(k3, (2,), jnp.float32),
        fc_b=0.1 * jax.random.normal(k4, (1,), jnp.float32),
    )


if __name__ == "__main__":
    # small synthetic problem: N nodes on a ring, M queried links
    N = 16
    POS_DIM = 4
    IN_FEATS = 32          # == hidden_dim so conv1 -> conv2 stacking is consistent
    HIDDEN = 32
    M = 8

    key = jax.random.PRNGKey(0)
    kx, kp, kparams = jax.random.split(key, 3)

    pos = jax.random.normal(kp, (N, POS_DIM), jnp.float32)
    feats = jax.random.normal(kx, (N, IN_FEATS), jnp.float32)

    # bidirectional ring graph: 2*N directed edges
    nodes = jnp.arange(N, dtype=jnp.int32)
    nxt = (nodes + 1) % N
    edge_index = jnp.stack([jnp.concatenate([nodes, nxt]),
                            jnp.concatenate([nxt, nodes])])        # [2, 2N]

    # link queries
    idx = jnp.stack([jnp.arange(M, dtype=jnp.int32),
                     (jnp.arange(M, dtype=jnp.int32) + N // 2) % N])   # [2, M]

    params = init_params(kparams, IN_FEATS, POS_DIM, HIDDEN)

    out = jax.jit(net_forward)(params, pos, feats, edge_index, idx)
    jax.block_until_ready(out)
    assert out.shape == (M, 1) and out.dtype == jnp.float32
    print("KERNEL_OK")
</pallas_src>

<mosaic_0001>
module attributes {stable_mosaic.version = 11 : i64} {
  func.func @_net_fused_kernel(%arg0: memref<16x4xf32, #tpu.memory_space<vmem>>, %arg1: memref<16x32xf32, #tpu.memory_space<vmem>>, %arg2: memref<16x16xf32, #tpu.memory_space<vmem>>, %arg3: memref<8xf32, #tpu.memory_space<smem>>, %arg4: memref<8xf32, #tpu.memory_space<smem>>, %arg5: memref<8xf32, #tpu.memory_space<smem>>, %arg6: memref<1xf32, #tpu.memory_space<smem>>, %arg7: memref<32x32xf32, #tpu.memory_space<vmem>>, %arg8: memref<1x32xf32, #tpu.memory_space<vmem>>, %arg9: memref<8xf32, #tpu.memory_space<smem>>, %arg10: memref<8xf32, #tpu.memory_space<smem>>, %arg11: memref<8xf32, #tpu.memory_space<smem>>, %arg12: memref<1xf32, #tpu.memory_space<smem>>, %arg13: memref<32x32xf32, #tpu.memory_space<vmem>>, %arg14: memref<1x32xf32, #tpu.memory_space<vmem>>, %arg15: memref<2xf32, #tpu.memory_space<smem>>, %arg16: memref<1xf32, #tpu.memory_space<smem>>, %arg17: memref<128x1xi32, #tpu.memory_space<vmem>>, %arg18: memref<128x1xi32, #tpu.memory_space<vmem>>, %arg19: memref<1x128xf32, #tpu.memory_space<vmem>>) attributes {dimension_semantics = [], scalar_prefetch = 0 : i64, scratch_operands = 0 : i64, tpu.core_type = #tpu.core_type<tc>} {
    %c0 = arith.constant 0 : index
    %c0_0 = arith.constant 0 : index
    %0 = vector.load %arg0[%c0, %c0_0] : memref<16x4xf32, #tpu.memory_space<vmem>>, vector<16x4xf32>
    %c0_1 = arith.constant 0 : index
    %c0_2 = arith.constant 0 : index
    %1 = vector.load %arg1[%c0_1, %c0_2] : memref<16x32xf32, #tpu.memory_space<vmem>>, vector<16x32xf32>
    %c0_3 = arith.constant 0 : index
    %c0_4 = arith.constant 0 : index
    %2 = vector.load %arg2[%c0_3, %c0_4] : memref<16x16xf32, #tpu.memory_space<vmem>>, vector<16x16xf32>
    %3 = arith.truncf %0 : vector<16x4xf32> to vector<16x4xbf16>
    %cst = arith.constant dense<0.000000e+00> : vector<16x16xf32>
    %4 = tpu.matmul %3, %3, %cst {dimension_numbers = #tpu.dot_dimension_numbers<[1], [1], [0], [0], [0, 0, 1, 0], [], []>} : vector<16x4xbf16>, vector<16x4xbf16>, vector<16x16xf32> -> vector<16x16xf32>
    %5 = arith.mulf %0, %0 : vector<16x4xf32>
    %cst_5 = arith.constant dense<0.000000e+00> : vector<16xf32>
    %6 = vector.multi_reduction <add>, %5, %cst_5 [1] : vector<16x4xf32> to vector<16xf32>
    %7 = vector.shape_cast %6 : vector<16xf32> to vector<16x1xf32>
    %8 = tpu.transpose %7, [1, 0] : vector<16x1xf32> -> vector<1x16xf32>
    %9 = vector.broadcast %7 : vector<16x1xf32> to vector<16x16xf32>
    %10 = vector.broadcast %8 : vector<1x16xf32> to vector<16x16xf32>
    %11 = arith.addf %9, %10 : vector<16x16xf32>
    %cst_6 = arith.constant 2.000000e+00 : f32
    %12 = vector.broadcast %cst_6 : f32 to vector<16x16xf32>
    %13 = arith.mulf %12, %4 : vector<16x16xf32>
    %14 = arith.subf %11, %13 : vector<16x16xf32>
    %cst_7 = arith.constant 0.000000e+00 : f32
    %15 = vector.broadcast %cst_7 : f32 to vector<16x16xf32>
    %16 = arith.maximumf %14, %15 : vector<16x16xf32>
    %c0_8 = arith.constant 0 : index
    %17 = memref.load %arg3[%c0_8] : memref<8xf32, #tpu.memory_space<smem>>
    %18 = vector.broadcast %17 : f32 to vector<16x16xf32>
    %19 = arith.mulf %16, %18 : vector<16x16xf32>
    %c0_9 = arith.constant 0 : index
    %20 = memref.load %arg4[%c0_9] : memref<8xf32, #tpu.memory_space<smem>>
    %21 = vector.broadcast %20 : f32 to vector<16x16xf32>
    %22 = arith.addf %19, %21 : vector<16x16xf32>
    %cst_10 = arith.constant 0.000000e+00 : f32
    %23 = vector.broadcast %cst_10 : f32 to vector<16x16xf32>
    %24 = arith.maximumf %22, %23 : vector<16x16xf32>
    %c0_11 = arith.constant 0 : index
    %25 = memref.load %arg5[%c0_11] : memref<8xf32, #tpu.memory_space<smem>>
    %26 = vector.broadcast %25 : f32 to vector<16x16xf32>
    %27 = arith.mulf %24, %26 : vector<16x16xf32>
    %c1 = arith.constant 1 : index
    %28 = memref.load %arg3[%c1] : memref<8xf32, #tpu.memory_space<smem>>
    %29 = vector.broadcast %28 : f32 to vector<16x16xf32>
    %30 = arith.mulf %16, %29 : vector<16x16xf32>
    %c1_12 = arith.constant 1 : index
    %31 = memref.load %arg4[%c1_12] : memref<8xf32, #tpu.memory_space<smem>>
    %32 = vector.broadcast %31 : f32 to vector<16x16xf32>
    %33 = arith.addf %30, %32 : vector<16x16xf32>
    %cst_13 = arith.constant 0.000000e+00 : f32
    %34 = vector.broadcast %cst_13 : f32 to vector<16x16xf32>
    %35 = arith.maximumf %33, %34 : vector<16x16xf32>
    %c1_14 = arith.constant 1 : index
    %36 = memref.load %arg5[%c1_14] : memref<8xf32, #tpu.memory_space<smem>>
    %37 = vector.broadcast %36 : f32 to vector<16x16xf32>
    %38 = arith.mulf %35, %37 : vector<16x16xf32>
    %39 = arith.addf %27, %38 : vector<16x16xf32>
    %c2 = arith.constant 2 : index
    %40 = memref.load %arg3[%c2] : memref<8xf32, #tpu.memory_space<smem>>
    %41 = vector.broadcast %40 : f32 to vector<16x16xf32>
    %42 = arith.mulf %16, %41 : vector<16x16xf32>
    %c2_15 = arith.constant 2 : index
    %43 = memref.load %arg4[%c2_15] : memref<8xf32, #tpu.memory_space<smem>>
    %44 = vector.broadcast %43 : f32 to vector<16x16xf32>
    %45 = arith.addf %42, %44 : vector<16x16xf32>
    %cst_16 = arith.constant 0.000000e+00 : f32
    %46 = vector.broadcast %cst_16 : f32 to vector<16x16xf32>
    %47 = arith.maximumf %45, %46 : vector<16x16xf32>
    %c2_17 = arith.constant 2 : index
    %48 = memref.load %arg5[%c2_17] : memref<8xf32, #tpu.memory_space<smem>>
    %49 = vector.broadcast %48 : f32 to vector<16x16xf32>
    %50 = arith.mulf %47, %49 : vector<16x16xf32>
    %51 = arith.addf %39, %50 : vector<16x16xf32>
    %c3 = arith.constant 3 : index
    %52 = memref.load %arg3[%c3] : memref<8xf32, #tpu.memory_space<smem>>
    %53 = vector.broadcast %52 : f32 to vector<16x16xf32>
    %54 = arith.mulf %16, %53 : vector<16x16xf32>
    %c3_18 = arith.constant 3 : index
    %55 = memref.load %arg4[%c3_18] : memref<8xf32, #tpu.memory_space<smem>>
    %56 = vector.broadcast %55 : f32 to vector<16x16xf32>
    %57 = arith.addf %54, %56 : vector<16x16xf32>
    %cst_19 = arith.constant 0.000000e+00 : f32
    %58 = vector.broadcast %cst_19 : f32 to vector<16x16xf32>
    %59 = arith.maximumf %57, %58 : vector<16x16xf32>
    %c3_20 = arith.constant 3 : index
    %60 = memref.load %arg5[%c3_20] : memref<8xf32, #tpu.memory_space<smem>>
    %61 = vector.broadcast %60 : f32 to vector<16x16xf32>
    %62 = arith.mulf %59, %61 : vector<16x16xf32>
    %63 = arith.addf %51, %62 : vector<16x16xf32>
    %c4 = arith.constant 4 : index
    %64 = memref.load %arg3[%c4] : memref<8xf32, #tpu.memory_space<smem>>
    %65 = vector.broadcast %64 : f32 to vector<16x16xf32>
    %66 = arith.mulf %16, %65 : vector<16x16xf32>
    %c4_21 = arith.constant 4 : index
    %67 = memref.load %arg4[%c4_21] : memref<8xf32, #tpu.memory_space<smem>>
    %68 = vector.broadcast %67 : f32 to vector<16x16xf32>
    %69 = arith.addf %66, %68 : vector<16x16xf32>
    %cst_22 = arith.constant 0.000000e+00 : f32
    %70 = vector.broadcast %cst_22 : f32 to vector<16x16xf32>
    %71 = arith.maximumf %69, %70 : vector<16x16xf32>
    %c4_23 = arith.constant 4 : index
    %72 = memref.load %arg5[%c4_23] : memref<8xf32, #tpu.memory_space<smem>>
    %73 = vector.broadcast %72 : f32 to vector<16x16xf32>
    %74 = arith.mulf %71, %73 : vector<16x16xf32>
    %75 = arith.addf %63, %74 : vector<16x16xf32>
    %c5 = arith.constant 5 : index
    %76 = memref.load %arg3[%c5] : memref<8xf32, #tpu.memory_space<smem>>
    %77 = vector.broadcast %76 : f32 to vector<16x16xf32>
    %78 = arith.mulf %16, %77 : vector<16x16xf32>
    %c5_24 = arith.constant 5 : index
    %79 = memref.load %arg4[%c5_24] : memref<8xf32, #tpu.memory_space<smem>>
    %80 = vector.broadcast %79 : f32 to vector<16x16xf32>
    %81 = arith.addf %78, %80 : vector<16x16xf32>
    %cst_25 = arith.constant 0.000000e+00 : f32
    %82 = vector.broadcast %cst_25 : f32 to vector<16x16xf32>
    %83 = arith.maximumf %81, %82 : vector<16x16xf32>
    %c5_26 = arith.constant 5 : index
    %84 = memref.load %arg5[%c5_26] : memref<8xf32, #tpu.memory_space<smem>>
    %85 = vector.broadcast %84 : f32 to vector<16x16xf32>
    %86 = arith.mulf %83, %85 : vector<16x16xf32>
    %87 = arith.addf %75, %86 : vector<16x16xf32>
    %c6 = arith.constant 6 : index
    %88 = memref.load %arg3[%c6] : memref<8xf32, #tpu.memory_space<smem>>
    %89 = vector.broadcast %88 : f32 to vector<16x16xf32>
    %90 = arith.mulf %16, %89 : vector<16x16xf32>
    %c6_27 = arith.constant 6 : index
    %91 = memref.load %arg4[%c6_27] : memref<8xf32, #tpu.memory_space<smem>>
    %92 = vector.broadcast %91 : f32 to vector<16x16xf32>
    %93 = arith.addf %90, %92 : vector<16x16xf32>
    %cst_28 = arith.constant 0.000000e+00 : f32
    %94 = vector.broadcast %cst_28 : f32 to vector<16x16xf32>
    %95 = arith.maximumf %93, %94 : vector<16x16xf32>
    %c6_29 = arith.constant 6 : index
    %96 = memref.load %arg5[%c6_29] : memref<8xf32, #tpu.memory_space<smem>>
    %97 = vector.broadcast %96 : f32 to vector<16x16xf32>
    %98 = arith.mulf %95, %97 : vector<16x16xf32>
    %99 = arith.addf %87, %98 : vector<16x16xf32>
    %c7 = arith.constant 7 : index
    %100 = memref.load %arg3[%c7] : memref<8xf32, #tpu.memory_space<smem>>
    %101 = vector.broadcast %100 : f32 to vector<16x16xf32>
    %102 = arith.mulf %16, %101 : vector<16x16xf32>
    %c7_30 = arith.constant 7 : index
    %103 = memref.load %arg4[%c7_30] : memref<8xf32, #tpu.memory_space<smem>>
    %104 = vector.broadcast %103 : f32 to vector<16x16xf32>
    %105 = arith.addf %102, %104 : vector<16x16xf32>
    %cst_31 = arith.constant 0.000000e+00 : f32
    %106 = vector.broadcast %cst_31 : f32 to vector<16x16xf32>
    %107 = arith.maximumf %105, %106 : vector<16x16xf32>
    %c7_32 = arith.constant 7 : index
    %108 = memref.load %arg5[%c7_32] : memref<8xf32, #tpu.memory_space<smem>>
    %109 = vector.broadcast %108 : f32 to vector<16x16xf32>
    %110 = arith.mulf %107, %109 : vector<16x16xf32>
    %111 = arith.addf %99, %110 : vector<16x16xf32>
    %c0_33 = arith.constant 0 : index
    %112 = memref.load %arg6[%c0_33] : memref<1xf32, #tpu.memory_space<smem>>
    %113 = vector.broadcast %112 : f32 to vector<16x16xf32>
    %114 = arith.addf %111, %113 : vector<16x16xf32>
    %115 = arith.negf %114 : vector<16x16xf32>
    %116 = math.exp %115 : vector<16x16xf32>
    %cst_34 = arith.constant 1.000000e+00 : f32
    %117 = vector.broadcast %cst_34 : f32 to vector<16x16xf32>
    %118 = arith.addf %117, %116 : vector<16x16xf32>
    %119 = arith.divf %117, %118 : vector<16x16xf32>
    %120 = arith.mulf %2, %119 : vector<16x16xf32>
    %121 = arith.truncf %120 : vector<16x16xf32> to vector<16x16xbf16>
    %122 = arith.truncf %1 : vector<16x32xf32> to vector<16x32xbf16>
    %cst_35 = arith.constant dense<0.000000e+00> : vector<16x32xf32>
    %123 = tpu.matmul %121, %122, %cst_35 {dimension_numbers = #tpu.dot_dimension_numbers<[1], [0], [0], [1], [0, 0, 1, 1], [], []>} : vector<16x16xbf16>, vector<16x32xbf16>, vector<16x32xf32> -> vector<16x32xf32>
    %124 = arith.truncf %123 : vector<16x32xf32> to vector<16x32xbf16>
    %c0_36 = arith.constant 0 : index
    %c0_37 = arith.constant 0 : index
    %125 = vector.load %arg7[%c0_36, %c0_37] : memref<32x32xf32, #tpu.memory_space<vmem>>, vector<32x32xf32>
    %126 = arith.truncf %125 : vector<32x32xf32> to vector<32x32xbf16>
    %cst_38 = arith.constant dense<0.000000e+00> : vector<16x32xf32>
    %127 = tpu.matmul %124, %126, %cst_38 {dimension_numbers = #tpu.dot_dimension_numbers<[1], [0], [0], [1], [0, 0, 1, 1], [], []>} : vector<16x32xbf16>, vector<32x32xbf16>, vector<16x32xf32> -> vector<16x32xf32>
    %c0_39 = arith.constant 0 : index
    %c0_40 = arith.constant 0 : index
    %128 = vector.load %arg8[%c0_39, %c0_40] : memref<1x32xf32, #tpu.memory_space<vmem>>, vector<1x32xf32>
    %129 = vector.broadcast %128 : vector<1x32xf32> to vector<16x32xf32>
    %130 = arith.addf %127, %129 : vector<16x32xf32>
    %c0_41 = arith.constant 0 : index
    %131 = memref.load %arg9[%c0_41] : memref<8xf32, #tpu.memory_space<smem>>
    %132 = vector.broadcast %131 : f32 to vector<16x16xf32>
    %133 = arith.mulf %16, %132 : vector<16x16xf32>
    %c0_42 = arith.constant 0 : index
    %134 = memref.load %arg10[%c0_42] : memref<8xf32, #tpu.memory_space<smem>>
    %135 = vector.broadcast %134 : f32 to vector<16x16xf32>
    %136 = arith.addf %133, %135 : vector<16x16xf32>
    %cst_43 = arith.constant 0.000000e+00 : f32
    %137 = vector.broadcast %cst_43 : f32 to vector<16x16xf32>
    %138 = arith.maximumf %136, %137 : vector<16x16xf32>
    %c0_44 = arith.constant 0 : index
    %139 = memref.load %arg11[%c0_44] : memref<8xf32, #tpu.memory_space<smem>>
    %140 = vector.broadcast %139 : f32 to vector<16x16xf32>
    %141 = arith.mulf %138, %140 : vector<16x16xf32>
    %c1_45 = arith.constant 1 : index
    %142 = memref.load %arg9[%c1_45] : memref<8xf32, #tpu.memory_space<smem>>
    %143 = vector.broadcast %142 : f32 to vector<16x16xf32>
    %144 = arith.mulf %16, %143 : vector<16x16xf32>
    %c1_46 = arith.constant 1 : index
    %145 = memref.load %arg10[%c1_46] : memref<8xf32, #tpu.memory_space<smem>>
    %146 = vector.broadcast %145 : f32 to vector<16x16xf32>
    %147 = arith.addf %144, %146 : vector<16x16xf32>
    %cst_47 = arith.constant 0.000000e+00 : f32
    %148 = vector.broadcast %cst_47 : f32 to vector<16x16xf32>
    %149 = arith.maximumf %147, %148 : vector<16x16xf32>
    %c1_48 = arith.constant 1 : index
    %150 = memref.load %arg11[%c1_48] : memref<8xf32, #tpu.memory_space<smem>>
    %151 = vector.broadcast %150 : f32 to vector<16x16xf32>
    %152 = arith.mulf %149, %151 : vector<16x16xf32>
    %153 = arith.addf %141, %152 : vector<16x16xf32>
    %c2_49 = arith.constant 2 : index
    %154 = memref.load %arg9[%c2_49] : memref<8xf32, #tpu.memory_space<smem>>
    %155 = vector.broadcast %154 : f32 to vector<16x16xf32>
    %156 = arith.mulf %16, %155 : vector<16x16xf32>
    %c2_50 = arith.constant 2 : index
    %157 = memref.load %arg10[%c2_50] : memref<8xf32, #tpu.memory_space<smem>>
    %158 = vector.broadcast %157 : f32 to vector<16x16xf32>
    %159 = arith.addf %156, %158 : vector<16x16xf32>
    %cst_51 = arith.constant 0.000000e+00 : f32
    %160 = vector.broadcast %cst_51 : f32 to vector<16x16xf32>
    %161 = arith.maximumf %159, %160 : vector<16x16xf32>
    %c2_52 = arith.constant 2 : index
    %162 = memref.load %arg11[%c2_52] : memref<8xf32, #tpu.memory_space<smem>>
    %163 = vector.broadcast %162 : f32 to vector<16x16xf32>
    %164 = arith.mulf %161, %163 : vector<16x16xf32>
    %165 = arith.addf %153, %164 : vector<16x16xf32>
    %c3_53 = arith.constant 3 : index
    %166 = memref.load %arg9[%c3_53] : memref<8xf32, #tpu.memory_space<smem>>
    %167 = vector.broadcast %166 : f32 to vector<16x16xf32>
    %168 = arith.mulf %16, %167 : vector<16x16xf32>
    %c3_54 = arith.constant 3 : index
    %169 = memref.load %arg10[%c3_54] : memref<8xf32, #tpu.memory_space<smem>>
    %170 = vector.broadcast %169 : f32 to vector<16x16xf32>
    %171 = arith.addf %168, %170 : vector<16x16xf32>
    %cst_55 = arith.constant 0.000000e+00 : f32
    %172 = vector.broadcast %cst_55 : f32 to vector<16x16xf32>
    %173 = arith.maximumf %171, %172 : vector<16x16xf32>
    %c3_56 = arith.constant 3 : index
    %174 = memref.load %arg11[%c3_56] : memref<8xf32, #tpu.memory_space<smem>>
    %175 = vector.broadcast %174 : f32 to vector<16x16xf32>
    %176 = arith.mulf %173, %175 : vector<16x16xf32>
    %177 = arith.addf %165, %176 : vector<16x16xf32>
    %c4_57 = arith.constant 4 : index
    %178 = memref.load %arg9[%c4_57] : memref<8xf32, #tpu.memory_space<smem>>
    %179 = vector.broadcast %178 : f32 to vector<16x16xf32>
    %180 = arith.mulf %16, %179 : vector<16x16xf32>
    %c4_58 = arith.constant 4 : index
    %181 = memref.load %arg10[%c4_58] : memref<8xf32, #tpu.memory_space<smem>>
    %182 = vector.broadcast %181 : f32 to vector<16x16xf32>
    %183 = arith.addf %180, %182 : vector<16x16xf32>
    %cst_59 = arith.constant 0.000000e+00 : f32
    %184 = vector.broadcast %cst_59 : f32 to vector<16x16xf32>
    %185 = arith.maximumf %183, %184 : vector<16x16xf32>
    %c4_60 = arith.constant 4 : index
    %186 = memref.load %arg11[%c4_60] : memref<8xf32, #tpu.memory_space<smem>>
    %187 = vector.broadcast %186 : f32 to vector<16x16xf32>
    %188 = arith.mulf %185, %187 : vector<16x16xf32>
    %189 = arith.addf %177, %188 : vector<16x16xf32>
    %c5_61 = arith.constant 5 : index
    %190 = memref.load %arg9[%c5_61] : memref<8xf32, #tpu.memory_space<smem>>
    %191 = vector.broadcast %190 : f32 to vector<16x16xf32>
    %192 = arith.mulf %16, %191 : vector<16x16xf32>
    %c5_62 = arith.constant 5 : index
    %193 = memref.load %arg10[%c5_62] : memref<8xf32, #tpu.memory_space<smem>>
    %194 = vector.broadcast %193 : f32 to vector<16x16xf32>
    %195 = arith.addf %192, %194 : vector<16x16xf32>
    %cst_63 = arith.constant 0.000000e+00 : f32
    %196 = vector.broadcast %cst_63 : f32 to vector<16x16xf32>
    %197 = arith.maximumf %195, %196 : vector<16x16xf32>
    %c5_64 = arith.constant 5 : index
    %198 = memref.load %arg11[%c5_64] : memref<8xf32, #tpu.memory_space<smem>>
    %199 = vector.broadcast %198 : f32 to vector<16x16xf32>
    %200 = arith.mulf %197, %199 : vector<16x16xf32>
    %201 = arith.addf %189, %200 : vector<16x16xf32>
    %c6_65 = arith.constant 6 : index
    %202 = memref.load %arg9[%c6_65] : memref<8xf32, #tpu.memory_space<smem>>
    %203 = vector.broadcast %202 : f32 to vector<16x16xf32>
    %204 = arith.mulf %16, %203 : vector<16x16xf32>
    %c6_66 = arith.constant 6 : index
    %205 = memref.load %arg10[%c6_66] : memref<8xf32, #tpu.memory_space<smem>>
    %206 = vector.broadcast %205 : f32 to vector<16x16xf32>
    %207 = arith.addf %204, %206 : vector<16x16xf32>
    %cst_67 = arith.constant 0.000000e+00 : f32
    %208 = vector.broadcast %cst_67 : f32 to vector<16x16xf32>
    %209 = arith.maximumf %207, %208 : vector<16x16xf32>
    %c6_68 = arith.constant 6 : index
    %210 = memref.load %arg11[%c6_68] : memref<8xf32, #tpu.memory_space<smem>>
    %211 = vector.broadcast %210 : f32 to vector<16x16xf32>
    %212 = arith.mulf %209, %211 : vector<16x16xf32>
    %213 = arith.addf %201, %212 : vector<16x16xf32>
    %c7_69 = arith.constant 7 : index
    %214 = memref.load %arg9[%c7_69] : memref<8xf32, #tpu.memory_space<smem>>
    %215 = vector.broadcast %214 : f32 to vector<16x16xf32>
    %216 = arith.mulf %16, %215 : vector<16x16xf32>
    %c7_70 = arith.constant 7 : index
    %217 = memref.load %arg10[%c7_70] : memref<8xf32, #tpu.memory_space<smem>>
    %218 = vector.broadcast %217 : f32 to vector<16x16xf32>
    %219 = arith.addf %216, %218 : vector<16x16xf32>
    %cst_71 = arith.constant 0.000000e+00 : f32
    %220 = vector.broadcast %cst_71 : f32 to vector<16x16xf32>
    %221 = arith.maximumf %219, %220 : vector<16x16xf32>
    %c7_72 = arith.constant 7 : index
    %222 = memref.load %arg11[%c7_72] : memref<8xf32, #tpu.memory_space<smem>>
    %223 = vector.broadcast %222 : f32 to vector<16x16xf32>
    %224 = arith.mulf %221, %223 : vector<16x16xf32>
    %225 = arith.addf %213, %224 : vector<16x16xf32>
    %c0_73 = arith.constant 0 : index
    %226 = memref.load %arg12[%c0_73] : memref<1xf32, #tpu.memory_space<smem>>
    %227 = vector.broadcast %226 : f32 to vector<16x16xf32>
    %228 = arith.addf %225, %227 : vector<16x16xf32>
    %229 = arith.negf %228 : vector<16x16xf32>
    %230 = math.exp %229 : vector<16x16xf32>
    %cst_74 = arith.constant 1.000000e+00 : f32
    %231 = vector.broadcast %cst_74 : f32 to vector<16x16xf32>
    %232 = arith.addf %231, %230 : vector<16x16xf32>
    %233 = arith.divf %231, %232 : vector<16x16xf32>
    %234 = arith.mulf %2, %233 : vector<16x16xf32>
    %235 = arith.truncf %234 : vector<16x16xf32> to vector<16x16xbf16>
    %236 = arith.truncf %130 : vector<16x32xf32> to vector<16x32xbf16>
    %cst_75 = arith.constant dense<0.000000e+00> : vector<16x32xf32>
    %237 = tpu.matmul %235, %236, %cst_75 {dimension_numbers = #tpu.dot_dimension_numbers<[1], [0], [0], [1], [0, 0, 1, 1], [], []>} : vector<16x16xbf16>, vector<16x32xbf16>, vector<16x32xf32> -> vector<16x32xf32>
    %238 = arith.truncf %237 : vector<16x32xf32> to vector<16x32xbf16>
    %c0_76 = arith.constant 0 : index
    %c0_77 = arith.constant 0 : index
    %239 = vector.load %arg13[%c0_76, %c0_77] : memref<32x32xf32, #tpu.memory_space<vmem>>, vector<32x32xf32>
    %240 = arith.truncf %239 : vector<32x32xf32> to vector<32x32xbf16>
    %cst_78 = arith.constant dense<0.000000e+00> : vector<16x32xf32>
    %241 = tpu.matmul %238, %240, %cst_78 {dimension_numbers = #tpu.dot_dimension_numbers<[1], [0], [0], [1], [0, 0, 1, 1], [], []>} : vector<16x32xbf16>, vector<32x32xbf16>, vector<16x32xf32> -> vector<16x32xf32>
    %c0_79 = arith.constant 0 : index
    %c0_80 = arith.constant 0 : index
    %242 = vector.load %arg14[%c0_79, %c0_80] : memref<1x32xf32, #tpu.memory_space<vmem>>, vector<1x32xf32>
    %243 = vector.broadcast %242 : vector<1x32xf32> to vector<16x32xf32>
    %244 = arith.addf %241, %243 : vector<16x32xf32>
    %245 = tpu.iota {dimensions = array<i32: 1>} : vector<128x16xi32>
    %c0_81 = arith.constant 0 : index
    %c0_82 = arith.constant 0 : index
    %246 = vector.load %arg17[%c0_81, %c0_82] : memref<128x1xi32, #tpu.memory_space<vmem>>, vector<128x1xi32>
    %247 = vector.broadcast %246 : vector<128x1xi32> to vector<128x16xi32>
    %248 = arith.cmpi eq, %245, %247 : vector<128x16xi32>
    %249 = arith.extui %248 : vector<128x16xi1> to vector<128x16xi32>
    %250 = arith.sitofp %249 : vector<128x16xi32> to vector<128x16xf32>
    %c0_83 = arith.constant 0 : index
    %c0_84 = arith.constant 0 : index
    %251 = vector.load %arg18[%c0_83, %c0_84] : memref<128x1xi32, #tpu.memory_space<vmem>>, vector<128x1xi32>
    %252 = vector.broadcast %251 : vector<128x1xi32> to vector<128x16xi32>
    %253 = arith.cmpi eq, %245, %252 : vector<128x16xi32>
    %254 = arith.extui %253 : vector<128x16xi1> to vector<128x16xi32>
    %255 = arith.sitofp %254 : vector<128x16xi32> to vector<128x16xf32>
    %cst_85 = arith.constant dense<0.000000e+00> : vector<128x4xf32>
    %256 = tpu.matmul %250, %0, %cst_85 {dimension_numbers = #tpu.dot_dimension_numbers<[1], [0], [0], [1], [0, 0, 1, 1], [], []>} : vector<128x16xf32>, vector<16x4xf32>, vector<128x4xf32> -> vector<128x4xf32>
    %cst_86 = arith.constant dense<0.000000e+00> : vector<128x4xf32>
    %257 = tpu.matmul %255, %0, %cst_86 {dimension_numbers = #tpu.dot_dimension_numbers<[1], [0], [0], [1], [0, 0, 1, 1], [], []>} : vector<128x16xf32>, vector<16x4xf32>, vector<128x4xf32> -> vector<128x4xf32>
    %cst_87 = arith.constant dense<0.000000e+00> : vector<128x32xf32>
    %258 = tpu.matmul %250, %244, %cst_87 {dimension_numbers = #tpu.dot_dimension_numbers<[1], [0], [0], [1], [0, 0, 1, 1], [], []>} : vector<128x16xf32>, vector<16x32xf32>, vector<128x32xf32> -> vector<128x32xf32>
    %cst_88 = arith.constant dense<0.000000e+00> : vector<128x32xf32>
    %259 = tpu.matmul %255, %244, %cst_88 {dimension_numbers = #tpu.dot_dimension_numbers<[1], [0], [0], [1], [0, 0, 1, 1], [], []>} : vector<128x16xf32>, vector<16x32xf32>, vector<128x32xf32> -> vector<128x32xf32>
    %260 = arith.subf %256, %257 : vector<128x4xf32>
    %261 = arith.mulf %260, %260 : vector<128x4xf32>
    %cst_89 = arith.constant dense<0.000000e+00> : vector<128xf32>
    %262 = vector.multi_reduction <add>, %261, %cst_89 [1] : vector<128x4xf32> to vector<128xf32>
    %263 = vector.shape_cast %262 : vector<128xf32> to vector<128x1xf32>
    %264 = arith.mulf %258, %259 : vector<128x32xf32>
    %cst_90 = arith.constant dense<0.000000e+00> : vector<128xf32>
    %265 = vector.multi_reduction <add>, %264, %cst_90 [1] : vector<128x32xf32> to vector<128xf32>
    %266 = vector.shape_cast %265 : vector<128xf32> to vector<128x1xf32>
    %c0_91 = arith.constant 0 : index
    %267 = memref.load %arg15[%c0_91] : memref<2xf32, #tpu.memory_space<smem>>
    %268 = vector.broadcast %267 : f32 to vector<128x1xf32>
    %269 = arith.mulf %266, %268 : vector<128x1xf32>
    %c1_92 = arith.constant 1 : index
    %270 = memref.load %arg15[%c1_92] : memref<2xf32, #tpu.memory_space<smem>>
    %271 = vector.broadcast %270 : f32 to vector<128x1xf32>
    %272 = arith.mulf %263, %271 : vector<128x1xf32>
    %273 = arith.addf %269, %272 : vector<128x1xf32>
    %c0_93 = arith.constant 0 : index
    %274 = memref.load %arg16[%c0_93] : memref<1xf32, #tpu.memory_space<smem>>
    %275 = vector.broadcast %274 : f32 to vector<128x1xf32>
    %276 = arith.addf %273, %275 : vector<128x1xf32>
    %277 = tpu.transpose %276, [1, 0] : vector<128x1xf32> -> vector<1x128xf32>
    %c0_94 = arith.constant 0 : index
    %c0_95 = arith.constant 0 : index
    %278 = vector.load %arg19[%c0_94, %c0_95] : memref<1x128xf32, #tpu.memory_space<vmem>>, vector<1x128xf32>
    tpu.vector_store %arg19[%c0_94, %c0_95], %277 {strides = array<i32>} : memref<1x128xf32, #tpu.memory_space<vmem>>, vector<1x128xf32>,
    return
  }
}

</mosaic_0001>

<bundles_post_ra>
// kernel: net_forward.1
= control target key start
LH: loop header
LB: loop body
LE: loop exit
PB: predicated region body
PF: predicated region fallthrough
CT: control target
= control target key end

     0   :  { %s3505_s0 = inlined_call_operand.vmem [shape: f32[16,4], index: 0, kind: input, shape index: {}]   ;;  %s3506_s1 = inlined_call_operand.vmem [shape: f32[16,32], index: 1, kind: input, shape index: {}]   ;;  %s3507_s2 = inlined_call_operand.vmem [shape: f32[16,16], index: 2, kind: input, shape index: {}]   ;;  %s3508_s3 = inlined_call_operand.vmem [shape: f32[8], index: 3, kind: input, shape index: {}]   ;;  %s3509_s4 = inlined_call_operand.vmem [shape: f32[8], index: 4, kind: input, shape index: {}]   ;;  %s3510_s5 = inlined_call_operand.vmem [shape: f32[8], index: 5, kind: input, shape index: {}]   ;;  %s3511_s6 = inlined_call_operand.<no memory space> [shape: f32[1], index: 6, kind: input, shape index: {}]   ;;  %s3512_s7 = inlined_call_operand.vmem [shape: f32[32,32], index: 7, kind: input, shape index: {}]   ;;  %s3513_s8 = inlined_call_operand.vmem [shape: f32[1,32], index: 8, kind: input, shape index: {}]   ;;  %s3514_s9 = inlined_call_operand.vmem [shape: f32[8], index: 9, kind: input, shape index: {}]   ;;  %s3515_s10 = inlined_call_operand.vmem [shape: f32[8], index: 10, kind: input, shape index: {}]   ;;  %s3516_s11 = inlined_call_operand.vmem [shape: f32[8], index: 11, kind: input, shape index: {}]   ;;  %s3517_s12 = inlined_call_operand.<no memory space> [shape: f32[1], index: 12, kind: input, shape index: {}]   ;;  %s3518_s13 = inlined_call_operand.vmem [shape: f32[32,32], index: 13, kind: input, shape index: {}]   ;;  %s3519_s14 = inlined_call_operand.vmem [shape: f32[1,32], index: 14, kind: input, shape index: {}]   ;;  %s3520_s15 = inlined_call_operand.vmem [shape: f32[2], index: 15, kind: input, shape index: {}]   ;;  %s3521_s16 = inlined_call_operand.<no memory space> [shape: f32[1], index: 16, kind: input, shape index: {}]   ;;  %s3522_s17 = inlined_call_operand.vmem [shape: s32[128,1], index: 17, kind: input, shape index: {}]   ;;  %s3523_s18 = inlined_call_operand.vmem [shape: s32[128,1], index: 18, kind: input, shape index: {}]   ;;  %s3524_s19 = inlined_call_operand.vmem [shape: f32[1,128], index: 19, kind: output, shape index: {}]  }
   0x1   :  { %3590 = sst [smem:[#allocation50_spill]] %s3505_s0 }
   0x2   :  { %3591 = sst [smem:[#allocation51_spill]] %s3506_s1 }
   0x3   :  { %3592 = sst [smem:[#allocation52_spill]] %s3507_s2 }
   0x4   :  { %3593 = sst [smem:[#allocation53_spill]] %s3508_s3 }
   0x5   :  { %3594 = sst [smem:[#allocation54_spill]] %s3511_s6 }
   0x6   :  { %3595 = sst [smem:[#allocation55_spill]] %s3512_s7 }
   0x7   :  { %3596 = sst [smem:[#allocation56_spill]] %s3513_s8 }
   0x8   :  { %3597 = sst [smem:[#allocation57_spill]] %s3517_s12 }
   0x9   :  { %3598 = sst [smem:[#allocation58_spill]] %s3518_s13 }
   0xa   :  { %3599 = sst [smem:[#allocation59_spill]] %s3519_s14 }
   0xb   :  { %3600 = sst [smem:[#allocation60_spill]] %s3521_s16 }
   0xc   :  { %3601 = sst [smem:[#allocation61_spill]] %s3522_s17 }
   0xd   :  { %3602 = sst [smem:[#allocation62_spill]] %s3523_s18 }
   0xe   :  { %3603 = sst [smem:[#allocation63_spill]] %s3524_s19 }
   0xf   :  { %27 = vsyncpa [#allocation6], 0 }
  0x10   :  { %28 = vsyncpa [#allocation8], 0 }
  0x11   :  { %29 = vsyncpa [#allocation11], 0  ;;  %s53_s20 = sshll.u32 %s3509_s4, 4  ;;  %s54_s20 = int_to_ptr.vmem [resolvable:$true] %s53_s20 }
  0x12   :  { %30 = vsyncpa [#allocation14], 0  ;;  %s79_s22 = sshll.u32 %s3514_s9, 4  ;;  %s2316_s2 = scalar_lea.vmem %s54_s20, 16  ;;  %s80_s22 = int_to_ptr.vmem [resolvable:$true] %s79_s22 }
  0x13   :  { %p2317_p0 = scmp.ne.s32.totalorder %s54_s20, %s2316_s2  ;;  %p2321_p1 = scmp.lt.s32.totalorder %s54_s20, %s54_s20 }
  0x14   :  { %p2322_p2 = scmp.lt.s32.totalorder %s2316_s2, %s2316_s2 }
  0x16   :  { %p2323_p3 = por %p2322_p2, %p2321_p1 }
  0x18   :  { %p2324_p4 = pnand %p2323_p3, %p2317_p0 }
  0x1a   :  { %2327 = shalt.err (!%p2324_p4)
}
  0x1b   :  { %s2408_s23 = smov [#allocation7]   ;;  %s2328_s24 = scalar_lea.vmem %s80_s22, 16 }
  0x1c   :  { %56 = dma.vmem_to_smem %s54_s20, 16, %s2408_s23, [#allocation8]  }
  0x1d   :  { %p2329_p5 = scmp.ne.s32.totalorder %s80_s22, %s2328_s24  ;;  %p2333_p6 = scmp.lt.s32.totalorder %s80_s22, %s80_s22 }
  0x1e   :  { %p2334_p7 = scmp.lt.s32.totalorder %s2328_s24, %s2328_s24 }
  0x20   :  { %p2335_p8 = por %p2334_p7, %p2333_p6 }
  0x22   :  { %p2336_p9 = pnand %p2335_p8, %p2329_p5 }
  0x24   :  { %2339 = shalt.err (!%p2336_p9)
}
  0x25   :  { %s2409_s4 = smov [#allocation10]   ;;  %s99_s3 = sshll.u32 %s3516_s11, 4  ;;  %s100_s3 = int_to_ptr.vmem [resolvable:$true] %s99_s3 }
  0x26   :  { %82 = dma.vmem_to_smem %s80_s22, 16, %s2409_s4, [#allocation11]  }
  0x27   :  { %s3604_s28 = sld [smem:[#allocation53_spill]]  ;;  %s2340_s0 = scalar_lea.vmem %s100_s3, 16 }
  0x28   :  { %p2341_p10 = scmp.ne.s32.totalorder %s100_s3, %s2340_s0  ;;  %p2345_p11 = scmp.lt.s32.totalorder %s100_s3, %s100_s3 }
  0x29   :  { %p2346_p12 = scmp.lt.s32.totalorder %s2340_s0, %s2340_s0 }
  0x2b   :  { %p2347_p13 = por %p2346_p12, %p2345_p11 }
  0x2d   :  { %s43_s29 = sshll.u32 %s3604_s28, 4  ;;  %p2348_p0 = pnand %p2347_p13, %p2341_p10  ;;  %s44_s29 = int_to_ptr.vmem [resolvable:$true] %s43_s29 }
  0x2f   :  { %2351 = shalt.err (!%p2348_p0)
}
  0x30   :  { %s2410_s30 = smov [#allocation13]   ;;  %s2352_s20 = scalar_lea.vmem %s44_s29, 16 }
  0x31   :  { %102 = dma.vmem_to_smem %s100_s3, 16, %s2410_s30, [#allocation14]  }
  0x32   :  { %p2353_p1 = scmp.ne.s32.totalorder %s44_s29, %s2352_s20  ;;  %p2357_p2 = scmp.lt.s32.totalorder %s44_s29, %s44_s29 }
  0x33   :  { %p2358_p3 = scmp.lt.s32.totalorder %s2352_s20, %s2352_s20 }
  0x35   :  { %p2359_p4 = por %p2358_p3, %p2357_p2 }
  0x37   :  { %p2360_p5 = pnand %p2359_p4, %p2353_p1 }
  0x39   :  { %2363 = shalt.err (!%p2360_p5)
}
  0x3a   :  { %s2411_s11 = smov [#allocation5]   ;;  %s63_s22 = sshll.u32 %s3510_s5, 4  ;;  %s64_s22 = int_to_ptr.vmem [resolvable:$true] %s63_s22 }
  0x3b   :  { %46 = dma.vmem_to_smem %s44_s29, 16, %s2411_s11, [#allocation6]  }
  0x3c   :  { %s89_s24 = sshll.u32 %s3515_s10, 4  ;;  %s2364_s4 = scalar_lea.vmem %s64_s22, 16  ;;  %s90_s24 = int_to_ptr.vmem [resolvable:$true] %s89_s24 }
  0x3d   :  { %p2365_p6 = scmp.ne.s32.totalorder %s64_s22, %s2364_s4  ;;  %p2369_p7 = scmp.lt.s32.totalorder %s64_s22, %s64_s22 }
  0x3e   :  { %p2370_p8 = scmp.lt.s32.totalorder %s2364_s4, %s2364_s4 }
  0x40   :  { %p2371_p9 = por %p2370_p8, %p2369_p7 }
  0x42   :  { %p2372_p10 = pnand %p2371_p9, %p2365_p6 }
  0x44   :  { %2375 = shalt.err (!%p2372_p10)
}
  0x45   :  { %s2412_s9 = smov [#allocation9]   ;;  %s2376_s25 = scalar_lea.vmem %s90_s24, 16 }
  0x46   :  { %66 = dma.vmem_to_smem %s64_s22, 16, %s2412_s9, [#allocation8]  }
  0x47   :  { %p2377_p11 = scmp.ne.s32.totalorder %s90_s24, %s2376_s25  ;;  %p2381_p12 = scmp.lt.s32.totalorder %s90_s24, %s90_s24 }
  0x48   :  { %p2382_p13 = scmp.lt.s32.totalorder %s2376_s25, %s2376_s25 }
  0x4a   :  { %p2383_p0 = por %p2382_p13, %p2381_p12 }
  0x4c   :  { %p2384_p1 = pnand %p2383_p0, %p2377_p11 }
  0x4e   :  { %2387 = shalt.err (!%p2384_p1)
}
  0x4f   :  { %s2413_s5 = smov [#allocation12]   ;;  %s115_s26 = sshll.u32 %s3520_s15, 4  ;;  %s116_s26 = int_to_ptr.vmem [resolvable:$true] %s115_s26 }
  0x50   :  { %92 = dma.vmem_to_smem %s90_s24, 16, %s2413_s5, [#allocation11]  }
  0x51   :  { %s2388_s27 = scalar_lea.vmem %s116_s26, 16  ;;  %p2393_p3 = scmp.lt.s32.totalorder %s116_s26, %s116_s26 }
  0x52   :  { %p2389_p2 = scmp.ne.s32.totalorder %s116_s26, %s2388_s27  ;;  %p2394_p4 = scmp.lt.s32.totalorder %s2388_s27, %s2388_s27 }
  0x54   :  { %p2395_p5 = por %p2394_p4, %p2393_p3 }
  0x56   :  { %p2396_p6 = pnand %p2395_p5, %p2389_p2 }
  0x58   :  { %2399 = shalt.err (!%p2396_p6)
}
  0x59   :  { %s2414_s28 = smov [#allocation15]  }
  0x5a   :  { %118 = dma.vmem_to_smem %s116_s26, 16, %s2414_s28, [#allocation14]  }
  0x5b   :  { %2400 = dma.done.wait [#allocation6], 16  }
  0x5c   :  { %2401 = vsyncadd [#allocation6], 4294967280 }
  0x5d   :  { %2402 = dma.done.wait [#allocation8], 32  }
  0x5e   :  { %2403 = vsyncadd [#allocation8], 4294967264 }
  0x5f   :  { %2404 = dma.done.wait [#allocation11], 32  }
  0x60   :  { %2405 = vsyncadd [#allocation11], 4294967264 }
  0x61   :  { %2406 = dma.done.wait [#allocation14], 32  }
  0x62   :  { %2407 = vsyncadd [#allocation14], 4294967264 }
  0x63   :  { %146 = sfence }
  0x64   :  { %s3605_s0 = sld [smem:[#allocation50_spill]]  ;;  %vm155_vm0 = vcmask 31744   ;;  %v3586_v4 = vmov 0.0   ;;  %vm2416_vm1 = vmmov 0   ;;  %v3583_v18 = vlaneseq }
  0x65   :  { %2141 = vmatprep.subr.bf16.mxu0 %v3586_v4  ;;  %2143 = vmatprep.mubr.msk.bf16.mxu0 %vm2416_vm1, %v3586_v4  ;;  %s3606_s1 = sld [smem:[#allocation51_spill]]  ;;  %vm398_vm2 = vcmask 130048   ;;  %vm457_vm3 = vcmask 261120  }
  0x66   :  { %2147 = vmatprep.subr.bf16.mxu1 %v3586_v4  ;;  %2149 = vmatprep.mubr.msk.bf16.mxu1 %vm2416_vm1, %v3586_v4  ;;  %s2585_s23 = sld [smem:[#allocation5]]  ;;  %v241_v19 = vshrl.u32 %v3583_v18, 7 }
  0x67   :  { %s2587_s24 = sld [smem:[#allocation5 + $0x1]] }
  0x68   :  { %s2589_s4 = sld [smem:[#allocation7]]  ;;  %v242_v20 = vsub.s32 0, %v241_v19 }
  0x69   :  { %s2591_s9 = sld [smem:[#allocation7 + $0x1]] }
  0x6a   :  { %v2542_v0 = vld [vmem:[%s3605_s0] sm:$0xff]  ;;  %v2547_v1 = vld [vmem:[%s3605_s0 + $0x8] sm:$0xff]  ;;  %s2593_s25 = sld [smem:[#allocation5 + $0x2]] }
  0x6b   :  { %v200_v2 = vmul.f32 %v2542_v0, %v2542_v0  ;;  %v201_v3 = vmul.f32 %v2547_v1, %v2547_v1  ;;  %v154_v5 = vpack.c.bf16 %v2547_v1, %v2542_v0  ;;  %v150_v11 = vld [vmem:[%s3606_s1] sm:$0xff]  ;;  %v151_v12 = vld [vmem:[%s3606_s1 + $0x8] sm:$0xff]  ;;  %s2595_s5 = sld [smem:[#allocation7 + $0x2]] }
  0x6c   :  { %v397_v13 = vpack.c.bf16 %v151_v12, %v150_v11  ;;  %3607 = sst [smem:[#allocation20_spill]] %s2585_s23  ;;  %v253_v21 = vstv %s2585_s23 }
  0x6d   :  { %v202_v6 = vsel %vm155_vm0, %v200_v2, 0.0  ;;  %v157_v7 = vsel %vm155_vm0, %v154_v5, 0  ;;  %v205_v8 = vsel %vm155_vm0, %v201_v3, 0.0  ;;  %s2597_s10 = sld [smem:[#allocation9]]  ;;  %v267_v23 = vstv %s2587_s24 }
  0x6e   :  { %203 = vadd.xlane.f32.xlu0 %v202_v6  ;;  %2142 = vmatpush3.bf16.xpose.msra.mxu0 %v157_v7  ;;  %3608 = sst [smem:[#allocation21_spill]] %s2589_s4  ;;  %v257_v22 = vstv %s2589_s4 }
  0x6f   :  { %2161 = vmatprep.subr.bf16.mxu0 %v3586_v4  ;;  %2148 = vmatpush3.bf16.msra.mxu1 %v397_v13  ;;  %3609 = sst [smem:[#allocation22_spill]] %s2591_s9  ;;  %v271_v24 = vstv %s2591_s9 }
  0x70   :  { %2153 = vmatprep.subr.bf16.mxu1 %v3586_v4  ;;  %3610 = sst [smem:[#allocation23_spill]] %s2593_s25  ;;  %v283_v25 = vstv %s2593_s25 }
  0x71   :  { %3611 = sst [smem:[#allocation24_spill]] %s2595_s5  ;;  %v287_v28 = vstv %s2595_s5 }
  0x72   :  { %206 = vadd.xlane.f32.xlu0 %v205_v8  ;;  %s2599_s3 = sld [smem:[#allocation9 + $0x1]] }
  0x73   :  { %3612 = sst [smem:[#allocation25_spill]] %s2597_s10  ;;  %v263_v26 = vstv %s2597_s10 }
  0x74   :  { %s2601_s26 = sld [smem:[#allocation9 + $0x2]] }
  0x75   :  { %2144 = vmatmul.mubr.msk.bf16.vlgmr.msra.gmra.mxu0 %vm155_vm0, %v154_v5  ;;  %s2603_s27 = sld [smem:[#allocation5 + $0x3]] }
  0x76   :  { %2163 = vmatprep.mubr.msk.bf16.mxu0 %vm2416_vm1, %v3586_v4  ;;  %s2605_s28 = sld [smem:[#allocation7 + $0x3]] }
  0x77   :  { %s2607_s15 = sld [smem:[#allocation9 + $0x3]] }
  0x78   :  { %3613 = sst [smem:[#allocation26_spill]] %s2599_s3  ;;  %v277_v27 = vstv %s2599_s3 }
  0x79   :  { %s2609_s29 = sld [smem:[#allocation5 + $0x4]] }
  0x7a   :  { %3614 = sst [smem:[#allocation27_spill]] %s2601_s26  ;;  %v293_v29 = vstv %s2601_s26 }
  0x7b   :  { %s2611_s30 = sld [smem:[#allocation7 + $0x4]]  ;;  %v299_v30 = vstv %s2603_s27 }
  0x7c   :  { %3615 = sst [smem:[#allocation28_spill]] %s2605_s28  ;;  %v303_v31 = vstv %s2605_s28 }
  0x7d   :  { %3616 = sst [smem:[#allocation29_spill]] %s2607_s15  ;;  %v309_v32 = vstv %s2607_s15 }
  0x7e   :  { %s2613_s20 = sld [smem:[#allocation9 + $0x4]] }
  0x7f   :  { %3617 = sst [smem:[#allocation30_spill]] %s2609_s29  ;;  %v315_v33 = vstv %s2609_s29 }
  0x80   :  { %s2615_s11 = sld [smem:[#allocation5 + $0x5]] }
  0x81   :  { %3618 = sst [smem:[#allocation31_spill]] %s2611_s30  ;;  %v319_v34 = vstv %s2611_s30 }
  0x82   :  { %s2617_s21 = sld [smem:[#allocation7 + $0x5]] }
  0x83   :  { %s2619_s1 = sld [smem:[#allocation9 + $0x5]] }
  0x84   :  { %3619 = sst [smem:[#allocation32_spill]] %s2613_s20  ;;  %v325_v35 = vstv %s2613_s20 }
  0x85   :  { %s2621_s22 = sld [smem:[#allocation5 + $0x6]] }
  0x86   :  { %3620 = sst [smem:[#allocation33_spill]] %s2615_s11  ;;  %v331_v36 = vstv %s2615_s11 }
  0x87   :  { %s2623_s2 = sld [smem:[#allocation7 + $0x6]] }
  0x88   :  { %3621 = sst [smem:[#allocation34_spill]] %s2617_s21  ;;  %v335_v37 = vstv %s2617_s21 }
  0x89   :  { %3622 = sst [smem:[#allocation35_spill]] %s2619_s1  ;;  %v341_v38 = vstv %s2619_s1 }
  0x8a   :  { %s2625_s19 = sld [smem:[#allocation9 + $0x6]] }
  0x8b   :  { %3623 = sst [smem:[#allocation36_spill]] %s2621_s22  ;;  %v347_v39 = vstv %s2621_s22 }
  0x8c   :  { %s2627_s16 = sld [smem:[#allocation5 + $0x7]] }
  0x8d   :  { %s2629_s14 = sld [smem:[#allocation7 + $0x7]]  ;;  %v351_v40 = vstv %s2623_s2 }
  0x8e   :  { %s2631_s0 = sld [smem:[#allocation9 + $0x7]] }
  0x8f   :  { %s2633_s13 = sld [smem:[#allocation10]] }
  0x90   :  { %3624 = sst [smem:[#allocation37_spill]] %s2625_s19  ;;  %v357_v41 = vstv %s2625_s19 }
  0x91   :  { %s2635_s8 = sld [smem:[#allocation12]] }
  0x92   :  { %s2637_s17 = sld [smem:[#allocation13]]  ;;  %v363_v43 = vstv %s2627_s16 }
  0x93   :  { %3625 = sst [smem:[#allocation38_spill]] %s2629_s14 }
  0x94   :  { %s2639_s18 = sld [smem:[#allocation10 + $0x1]]  ;;  %v373_v45 = vstv %s2631_s0 }
  0x95   :  { %3626 = sst [smem:[#allocation39_spill]] %s2633_s13 }
  0x96   :  { %s2641_s7 = sld [smem:[#allocation12 + $0x1]] }
  0x97   :  { %3627 = sst [smem:[#allocation40_spill]] %s2635_s8 }
  0x98   :  { %s2643_s12 = sld [smem:[#allocation13 + $0x1]]  ;;  %v513_v50 = vstv %s2637_s17 }
  0x99   :  { %s2645_s6 = sld [smem:[#allocation10 + $0x2]] }
  0x9a   :  { %3628 = sst [smem:[#allocation41_spill]] %s2639_s18 }
  0x9b   :  { %s2647_s14 = sld [smem:[#allocation12 + $0x2]] }
  0x9c   :  { %3629 = sst [smem:[#allocation42_spill]] %s2641_s7 }
  0x9d   :  { %s2649_s13 = sld [smem:[#allocation13 + $0x2]] }
  0x9e   :  { %3630 = sst [smem:[#allocation43_spill]] %s2643_s12 }
  0x9f   :  { %3631 = sst [smem:[#allocation44_spill]] %s2645_s6 }
  0xa0   :  { %s2651_s8 = sld [smem:[#allocation10 + $0x3]] }
  0xa1   :  { %3632 = sst [smem:[#allocation45_spill]] %s2647_s14 }
  0xa2   :  { %s2653_s18 = sld [smem:[#allocation12 + $0x3]] }
  0xa3   :  { %3633 = sst [smem:[#allocation46_spill]] %s2649_s13 }
  0xa4   :  { %s2655_s7 = sld [smem:[#allocation13 + $0x3]] }
  0xa5   :  { %s2658_s6 = sld [smem:[#allocation10 + $0x4]] }
  0xa6   :  { %s2660_s14 = sld [smem:[#allocation12 + $0x4]]  ;;  %v549_v61 = vstv %s2651_s8 }
  0xa7   :  { %s2662_s12 = sld [smem:[#allocation13 + $0x4]] }
  0xa8   :  { %3634 = sst [smem:[#allocation47_spill]] %s2653_s18 }
  0xa9   :  { %s2664_s13 = sld [smem:[#allocation10 + $0x5]] }
  0xaa   :  { %3635 = sst [smem:[#allocation48_spill]] %s2655_s7  ;;  %v559_v3 = vstv %s2655_s7 }
  0xab   :  { %s2667_s18 = sld [smem:[#allocation12 + $0x5]]  ;;  %v565_v5 = vstv %s2658_s6 }
  0xac   :  { %3636 = sst [smem:[#allocation49_spill]] %s2660_s14 }
  0xad   :  { %s2673_s14 = sld [smem:[#allocation13 + $0x5]]  ;;  %v575_v7 = vstv %s2662_s12 }
  0xae   :  { %s2679_s23 = sld [smem:[#allocation10 + $0x6]] }
  0xaf   :  { %s3637_s4 = sld [smem:[#allocation38_spill]]  ;;  %v581_v8 = vstv %s2664_s13 }
  0xb0   :  { %s2685_s9 = sld [smem:[#allocation12 + $0x6]] }
  0xb1   :  { %s3638_s10 = sld [smem:[#allocation39_spill]] }
  0xb2   :  { %s3639_s3 = sld [smem:[#allocation40_spill]] }
  0xb3   :  { %s2691_s5 = sld [smem:[#allocation13 + $0x6]]  ;;  %v591_v12 = vstv %s2673_s14 }
  0xb4   :  { %s3641_s26 = sld [smem:[#allocation41_spill]]  ;;  %v597_v13 = vstv %s2679_s23 }
  0xb5   :  { %s3642_s27 = sld [smem:[#allocation42_spill]]  ;;  %v367_v44 = vstv %s3637_s4 }
  0xb6   :  { %s3643_s28 = sld [smem:[#allocation43_spill]] }
  0xb7   :  { %s3644_s15 = sld [smem:[#allocation44_spill]]  ;;  %v503_v48 = vstv %s3638_s10 }
  0xb8   :  { %s2697_s29 = sld [smem:[#allocation10 + $0x7]]  ;;  %v507_v49 = vstv %s3639_s3 }
  0xb9   :  { %3640 = sst [smem:[#allocation38_spill]] %s2691_s5 }
  0xba   :  { %s3645_s20 = sld [smem:[#allocation45_spill]]  ;;  %v517_v51 = vstv %s3641_s26 }
  0xbb   :  { %s3646_s11 = sld [smem:[#allocation54_spill]]  ;;  %v521_v52 = vstv %s3642_s27 }
  0xbc   :  { %s3647_s25 = sld [smem:[#allocation46_spill]]  ;;  %v527_v53 = vstv %s3643_s28 }
  0xbd   :  { %s2705_s1 = sld [smem:[#allocation12 + $0x7]]  ;;  %v533_v54 = vstv %s3644_s15 }
  0xbe   :  { %s3649_s22 = sld [smem:[#allocation47_spill]] }
  0xbf   :  { %s3650_s19 = sld [smem:[#allocation49_spill]] }
  0xc0   :  { %v537_v59 = vstv %s3645_s20  ;;  %s2922_s6 = sld [smem:[#allocation13 + $0x7]] }
  0xc1   :  { %v379_v46 = vstv %s3646_s11  ;;  %s3676_s15 = sld [smem:[#allocation52_spill]] }
  0xc2   :  { %v543_v60 = vstv %s3647_s25  ;;  %s3678_s2 = sld [smem:[#allocation55_spill]] }
  0xc3   :  { %3648 = sst [smem:[#allocation39_spill]] %s2705_s1 }
  0xc4   :  { %v553_v62 = vstv %s3649_s22  ;;  %s3679_s24 = sld [smem:[#allocation62_spill]] }
  0xc5   :  { %v569_v6 = vstv %s3650_s19  ;;  %s3680_s4 = sld [smem:[#allocation61_spill]] }
  0xc6   :  { %s3681_s30 = sld [smem:[#allocation56_spill]] }
  0xc7   :  { %s3682_s10 = sld [smem:[#allocation58_spill]] }
  0xc8   :  { %s3685_s22 = sld [smem:[#allocation59_spill]] }
  0xc9   :  { %s1796_s27 = sld [smem:[#allocation15]] }
  0xca   :  { %s3686_s11 = sld [smem:[#allocation60_spill]] }
  0xf7   :  { %v2568_v9 = vpop.xlane.xlu0 %203 }
  0xf8   :  { %208 = vxpose.xlu1.b32.start [1/2] (short) (narrow) %v2568_v9, 8 }
  0xfb   :  { %v2571_v10 = vpop.xlane.xlu0 %206 }
  0xfc   :  { %209 = vxpose.xlu1.b32.end [2/2] (short) (narrow) %v2571_v10, 8 }
 0x135   :  { %v2581_v14 = vpop.f32.mrf.mxu0 }
 0x136   :  { %v246_v55 = vmul.f32 2.0, %v2581_v14  ;;  %v601_v14 = vstv %s2685_s9 }
 0x137   :  { %v2145_v15 = vpop.f32.mrf.mxu0 }
 0x138   :  { %v607_v15 = vstv %s2691_s5  ;;  %s3687_s5 = sld [smem:[#allocation63_spill]] }
 0x139   :  { %v2583_v16 = vpop.f32.mrf.mxu0 }
 0x13a   :  { %v247_v56 = vmul.f32 2.0, %v2583_v16  ;;  %v613_v16 = vstv %s2697_s29  ;;  %s3684_s29 = sld [smem:[#allocation50_spill]] }
 0x13b   :  { %v2146_v17 = vpop.f32.mrf.mxu0 }
 0x13c   :  { %v617_v17 = vstv %s2705_s1 }
 0x174   :  { %v224_v42 = vpop.trf.xlu1 }
 0x175   :  { %v243_v47 = vrot.slane %v224_v42, %v242_v20 }
 0x177   :  { %v244_v57 = vadd.f32 %v243_v47, %v2568_v9  ;;  %v245_v58 = vadd.f32 %v243_v47, %v2571_v10  ;;  %v585_v9 = vstv %s2667_s18  ;;  %s3675_s18 = sld [smem:[#allocation57_spill]] }
 0x179   :  { %v248_v63 = vsub.f32 %v244_v57, %v246_v55  ;;  %v249_v2 = vsub.f32 %v245_v58, %v247_v56 }
 0x17b   :  { %v2728_v10 = vmax.f32 %v248_v63, 0.0  ;;  %v2730_v11 = vmax.f32 %v249_v2, 0.0 }
 0x17d   :  { %v254_v19 = vmul.f32 %v253_v21, %v2728_v10  ;;  %v255_v20 = vmul.f32 %v253_v21, %v2730_v11  ;;  %v268_v42 = vmul.f32 %v267_v23, %v2728_v10  ;;  %v269_v47 = vmul.f32 %v267_v23, %v2730_v11 }
 0x17e   :  { %v284_v55 = vmul.f32 %v283_v25, %v2728_v10  ;;  %v285_v56 = vmul.f32 %v283_v25, %v2730_v11  ;;  %v300_v57 = vmul.f32 %v299_v30, %v2728_v10  ;;  %v301_v58 = vmul.f32 %v299_v30, %v2730_v11 }
 0x17f   :  { %v258_v63 = vadd.f32 %v257_v22, %v254_v19  ;;  %v259_v21 = vadd.f32 %v257_v22, %v255_v20  ;;  %v272_v2 = vadd.f32 %v271_v24, %v268_v42  ;;  %v273_v23 = vadd.f32 %v271_v24, %v269_v47 }
 0x180   :  { %v288_v18 = vadd.f32 %v287_v28, %v284_v55  ;;  %v289_v25 = vadd.f32 %v287_v28, %v285_v56  ;;  %v304_v30 = vadd.f32 %v303_v31, %v300_v57  ;;  %v305_v19 = vadd.f32 %v303_v31, %v301_v58 }
 0x181   :  { %v260_v22 = vmax.f32 %v258_v63, 0.0  ;;  %v261_v20 = vmax.f32 %v259_v21, 0.0  ;;  %v274_v4 = vmax.f32 %v272_v2, 0.0  ;;  %v275_v42 = vmax.f32 %v273_v23, 0.0 }
 0x182   :  { %v290_v24 = vmax.f32 %v288_v18, 0.0  ;;  %v291_v47 = vmax.f32 %v289_v25, 0.0  ;;  %v306_v55 = vmax.f32 %v304_v30, 0.0  ;;  %v307_v28 = vmax.f32 %v305_v19, 0.0 }
 0x183   :  { %v264_v56 = vmul.f32 %v263_v26, %v260_v22  ;;  %v265_v57 = vmul.f32 %v263_v26, %v261_v20  ;;  %v278_v31 = vmul.f32 %v277_v27, %v274_v4  ;;  %v279_v58 = vmul.f32 %v277_v27, %v275_v42 }
 0x184   :  { %v294_v63 = vmul.f32 %v293_v29, %v290_v24  ;;  %v295_v18 = vmul.f32 %v293_v29, %v291_v47  ;;  %v310_v21 = vmul.f32 %v309_v32, %v306_v55  ;;  %v311_v2 = vmul.f32 %v309_v32, %v307_v28 }
 0x185   :  { %v280_v23 = vadd.f32 %v278_v31, %v264_v56  ;;  %v281_v26 = vadd.f32 %v279_v58, %v265_v57  ;;  %v316_v4 = vmul.f32 %v315_v33, %v2728_v10  ;;  %v317_v27 = vmul.f32 %v315_v33, %v2730_v11 }
 0x186   :  { %v332_v25 = vmul.f32 %v331_v36, %v2728_v10  ;;  %v333_v29 = vmul.f32 %v331_v36, %v2730_v11  ;;  %v348_v30 = vmul.f32 %v347_v39, %v2728_v10  ;;  %v349_v32 = vmul.f32 %v347_v39, %v2730_v11 }
 0x187   :  { %v296_v19 = vadd.f32 %v294_v63, %v280_v23  ;;  %v297_v22 = vadd.f32 %v295_v18, %v281_v26  ;;  %v320_v20 = vadd.f32 %v319_v34, %v316_v4  ;;  %v321_v33 = vadd.f32 %v319_v34, %v317_v27 }
 0x188   :  { %v336_v42 = vadd.f32 %v335_v37, %v332_v25  ;;  %v337_v36 = vadd.f32 %v335_v37, %v333_v29  ;;  %v352_v24 = vadd.f32 %v351_v40, %v348_v30  ;;  %v353_v39 = vadd.f32 %v351_v40, %v349_v32 }
 0x189   :  { %v312_v47 = vadd.f32 %v310_v21, %v296_v19  ;;  %v313_v55 = vadd.f32 %v311_v2, %v297_v22  ;;  %v322_v28 = vmax.f32 %v320_v20, 0.0  ;;  %v323_v56 = vmax.f32 %v321_v33, 0.0 }
 0x18a   :  { %v338_v34 = vmax.f32 %v336_v42, 0.0  ;;  %v339_v57 = vmax.f32 %v337_v36, 0.0  ;;  %v354_v31 = vmax.f32 %v352_v24, 0.0  ;;  %v355_v37 = vmax.f32 %v353_v39, 0.0 }
 0x18b   :  { %v326_v58 = vmul.f32 %v325_v35, %v322_v28  ;;  %v327_v63 = vmul.f32 %v325_v35, %v323_v56  ;;  %v364_v40 = vmul.f32 %v363_v43, %v2728_v10  ;;  %v365_v18 = vmul.f32 %v363_v43, %v2730_v11 }
 0x18c   :  { %v342_v21 = vmul.f32 %v341_v38, %v338_v34  ;;  %v343_v2 = vmul.f32 %v341_v38, %v339_v57  ;;  %v358_v23 = vmul.f32 %v357_v41, %v354_v31  ;;  %v359_v26 = vmul.f32 %v357_v41, %v355_v37 }
 0x18d   :  { %v328_v4 = vadd.f32 %v326_v58, %v312_v47  ;;  %v329_v35 = vadd.f32 %v327_v63, %v313_v55  ;;  %v368_v27 = vadd.f32 %v367_v44, %v364_v40  ;;  %v369_v25 = vadd.f32 %v367_v44, %v365_v18 }
 0x18e   :  { %v504_v43 = vmul.f32 %v503_v48, %v2728_v10  ;;  %v505_v38 = vmul.f32 %v503_v48, %v2730_v11  ;;  %v518_v29 = vmul.f32 %v517_v51, %v2728_v10  ;;  %v519_v41 = vmul.f32 %v517_v51, %v2730_v11 }
 0x18f   :  { %v344_v30 = vadd.f32 %v342_v21, %v328_v4  ;;  %v345_v32 = vadd.f32 %v343_v2, %v329_v35  ;;  %v370_v19 = vmax.f32 %v368_v27, 0.0  ;;  %v371_v22 = vmax.f32 %v369_v25, 0.0 }
 0x190   :  { %v508_v44 = vadd.f32 %v507_v49, %v504_v43  ;;  %v509_v20 = vadd.f32 %v507_v49, %v505_v38  ;;  %v522_v48 = vadd.f32 %v521_v52, %v518_v29  ;;  %v523_v33 = vadd.f32 %v521_v52, %v519_v41 }
 0x191   :  { %v360_v42 = vadd.f32 %v358_v23, %v344_v30  ;;  %v361_v51 = vadd.f32 %v359_v26, %v345_v32  ;;  %v374_v36 = vmul.f32 %v373_v45, %v370_v19  ;;  %v375_v24 = vmul.f32 %v373_v45, %v371_v22 }
 0x192   :  { %v510_v39 = vmax.f32 %v508_v44, 0.0  ;;  %v511_v47 = vmax.f32 %v509_v20, 0.0  ;;  %v524_v55 = vmax.f32 %v522_v48, 0.0  ;;  %v525_v49 = vmax.f32 %v523_v33, 0.0 }
 0x193   :  { %v376_v28 = vadd.f32 %v374_v36, %v360_v42  ;;  %v377_v56 = vadd.f32 %v375_v24, %v361_v51  ;;  %v534_v52 = vmul.f32 %v533_v54, %v2728_v10  ;;  %v535_v34 = vmul.f32 %v533_v54, %v2730_v11 }
 0x194   :  { %v514_v57 = vmul.f32 %v513_v50, %v510_v39  ;;  %v515_v45 = vmul.f32 %v513_v50, %v511_v47  ;;  %v528_v31 = vmul.f32 %v527_v53, %v524_v55  ;;  %v529_v37 = vmul.f32 %v527_v53, %v525_v49 }
 0x195   :  { %v380_v58 = vadd.f32 %v379_v46, %v376_v28  ;;  %v381_v54 = vadd.f32 %v379_v46, %v377_v56  ;;  %v538_v50 = vadd.f32 %v537_v59, %v534_v52  ;;  %v539_v63 = vadd.f32 %v537_v59, %v535_v34 }
 0x196   :  { %v530_v40 = vadd.f32 %v528_v31, %v514_v57  ;;  %v531_v53 = vadd.f32 %v529_v37, %v515_v45  ;;  %v550_v18 = vmul.f32 %v549_v61, %v2728_v10  ;;  %v551_v21 = vmul.f32 %v549_v61, %v2730_v11 }
 0x197   :  { %v1929_v2 = vmul.f32 -1.442695, %v380_v58  ;;  %v1930_v23 = vmul.f32 -1.442695, %v381_v54  ;;  %v540_v26 = vmax.f32 %v538_v50, 0.0  ;;  %v541_v46 = vmax.f32 %v539_v63, 0.0 }
 0x198   :  { %v554_v4 = vadd.f32 %v553_v62, %v550_v18  ;;  %v555_v59 = vadd.f32 %v553_v62, %v551_v21  ;;  %v566_v35 = vmul.f32 %v565_v5, %v2728_v10  ;;  %v567_v27 = vmul.f32 %v565_v5, %v2730_v11 }
 0x199   :  { %2299 = vpow2.f32 %v1929_v2  ;;  %v544_v61 = vmul.f32 %v543_v60, %v540_v26  ;;  %v545_v25 = vmul.f32 %v543_v60, %v541_v46  ;;  %v582_v43 = vmul.f32 %v581_v8, %v2728_v10 }
 0x19a   :  { %2301 = vpow2.f32 %v1930_v23  ;;  %v556_v62 = vmax.f32 %v554_v4, 0.0  ;;  %v557_v38 = vmax.f32 %v555_v59, 0.0  ;;  %v570_v29 = vadd.f32 %v569_v6, %v566_v35  ;;  %v152_v4 = vld [vmem:[%s3676_s15] sm:$0xff]  ;;  %v153_v59 = vld [vmem:[%s3676_s15 + $0x8] sm:$0xff] }
 0x19b   :  { %v546_v41 = vadd.f32 %v544_v61, %v530_v40  ;;  %v547_v5 = vadd.f32 %v545_v25, %v531_v53  ;;  %v571_v30 = vadd.f32 %v569_v6, %v567_v27  ;;  %v583_v60 = vmul.f32 %v581_v8, %v2730_v11 }
 0x19c   :  { %v560_v32 = vmul.f32 %v559_v3, %v556_v62  ;;  %v561_v19 = vmul.f32 %v559_v3, %v557_v38  ;;  %v572_v22 = vmax.f32 %v570_v29, 0.0  ;;  %v586_v44 = vadd.f32 %v585_v9, %v582_v43 }
 0x19d   :  { %v573_v20 = vmax.f32 %v571_v30, 0.0  ;;  %v587_v6 = vadd.f32 %v585_v9, %v583_v60  ;;  %v598_v8 = vmul.f32 %v597_v13, %v2728_v10  ;;  %v599_v48 = vmul.f32 %v597_v13, %v2730_v11 }
 0x19e   :  { %v562_v33 = vadd.f32 %v560_v32, %v546_v41  ;;  %v563_v42 = vadd.f32 %v561_v19, %v547_v5  ;;  %v576_v3 = vmul.f32 %v575_v7, %v572_v22  ;;  %v588_v51 = vmax.f32 %v586_v44, 0.0  ;;  %v446_v44 = vld [vmem:[%s3678_s2 + $0x10] sm:$0xff] }
 0x19f   :  { %v577_v36 = vmul.f32 %v575_v7, %v573_v20  ;;  %v589_v24 = vmax.f32 %v587_v6, 0.0  ;;  %v602_v9 = vadd.f32 %v601_v14, %v598_v8  ;;  %v603_v39 = vadd.f32 %v601_v14, %v599_v48  ;;  %v447_v20 = vld [vmem:[%s3678_s2 + $0x18] sm:$0xff]  ;;  %v444_v8 = vld [vmem:[%s3678_s2] sm:$0xff]  ;;  %v445_v48 = vld [vmem:[%s3678_s2 + $0x8] sm:$0xff]  ;;  %s2056_s2 = sld [smem:[#allocation15 + $0x1]] }
 0x1a0   :  { %v578_v47 = vadd.f32 %v576_v3, %v562_v33  ;;  %v592_v13 = vmul.f32 %v591_v12, %v588_v51  ;;  %v614_v55 = vmul.f32 %v613_v16, %v2728_v10  ;;  %v615_v49 = vmul.f32 %v613_v16, %v2730_v11 }
 0x1a1   :  { %v579_v28 = vadd.f32 %v577_v36, %v563_v42  ;;  %v593_v7 = vmul.f32 %v591_v12, %v589_v24  ;;  %v604_v56 = vmax.f32 %v602_v9, 0.0  ;;  %v605_v52 = vmax.f32 %v603_v39, 0.0  ;;  %v864_v9 = vld [vmem:[%s3679_s24] sm:$0xff] }
 0x1a2   :  { %v594_v34 = vadd.f32 %v592_v13, %v578_v47  ;;  %v618_v57 = vadd.f32 %v617_v17, %v614_v55  ;;  %v619_v45 = vadd.f32 %v617_v17, %v615_v49  ;;  %v623_v58 = vstv %s2922_s6  ;;  %v752_v47 = vld [vmem:[%s3680_s4] sm:$0xff]  ;;  %v753_v13 = vld [vmem:[%s3680_s4 + $0x8] sm:$0xff]  ;;  %v755_v55 = vld [vmem:[%s3680_s4 + $0x18] sm:$0xff] }
 0x1a3   :  { %v595_v14 = vadd.f32 %v593_v7, %v579_v28  ;;  %v608_v31 = vmul.f32 %v607_v15, %v604_v56  ;;  %v609_v37 = vmul.f32 %v607_v15, %v605_v52  ;;  %v629_v18 = vstv %s3675_s18  ;;  %v865_v49 = vld [vmem:[%s3679_s24 + $0x8] sm:$0xff]  ;;  %v756_v28 = vld [vmem:[%s3680_s4 + $0x20] sm:$0xff]  ;;  %v754_v7 = vld [vmem:[%s3680_s4 + $0x10] sm:$0xff] }
 0x1a4   :  { %v620_v10 = vmax.f32 %v618_v57, 0.0  ;;  %v621_v54 = vmax.f32 %v619_v45, 0.0  ;;  %v3677_v5 = vmov 0.0   ;;  %v449_v6 = vpack.c.bf16 %v447_v20, %v446_v44  ;;  %v757_v56 = vld [vmem:[%s3680_s4 + $0x28] sm:$0xff]  ;;  %v866_v52 = vld [vmem:[%s3679_s24 + $0x10] sm:$0xff]  ;;  %v867_v57 = vld [vmem:[%s3679_s24 + $0x18] sm:$0xff] }
 0x1a5   :  { %v610_v50 = vadd.f32 %v608_v31, %v594_v34  ;;  %v611_v11 = vadd.f32 %v609_v37, %v595_v14  ;;  %v448_v33 = vpack.c.bf16 %v445_v48, %v444_v8  ;;  %v2417_v39 = vmov 0   ;;  %v758_v34 = vld [vmem:[%s3680_s4 + $0x30] sm:$0xff]  ;;  %v868_v45 = vld [vmem:[%s3679_s24 + $0x20] sm:$0xff]  ;;  %v869_v14 = vld [vmem:[%s3679_s24 + $0x28] sm:$0xff] }
 0x1a6   :  { %v2300_v16 = vpop.eup %2299  ;;  %v624_v63 = vmul.f32 %v623_v58, %v620_v10  ;;  %v625_v12 = vmul.f32 %v623_v58, %v621_v54  ;;  %2298 = vset.pattern.permute.xlu1 %v2417_v39  ;;  %2297 = vset.pattern.permute.xlu0 %v2417_v39  ;;  %v870_v31 = vld [vmem:[%s3679_s24 + $0x30] sm:$0xff]  ;;  %v1932_v58 = vld [vmem:[%s3681_s30] ss:$0 sm:$0xff] }
 0x1a7   :  { %v2302_v40 = vpop.eup %2301  ;;  %v388_v53 = vadd.f32 1.0, %v2300_v16  ;;  %881 = vperm.xlu1 %2298, %v864_v9   ;;  %769 = vperm.xlu0 %2297, %v752_v47   ;;  %v876_v20 = vld [vmem:[%s3679_s24 + $0x60] sm:$0xff]  ;;  %v878_v9 = vld [vmem:[%s3679_s24 + $0x70] sm:$0xff]  ;;  %v767_v47 = vld [vmem:[%s3680_s4 + $0x78] sm:$0xff] }
 0x1a8   :  { %v389_v17 = vadd.f32 1.0, %v2302_v40  ;;  %v626_v21 = vadd.f32 %v624_v63, %v610_v50  ;;  %v627_v2 = vadd.f32 %v625_v12, %v611_v11  ;;  %v695_v12 = vld [vmem:[%s3682_s10 + $0x10] sm:$0xff]  ;;  %v696_v40 = vld [vmem:[%s3682_s10 + $0x18] sm:$0xff] }
 0x1a9   :  { %2303 = vrcp.f32 %v388_v53  ;;  %v759_v53 = vld [vmem:[%s3680_s4 + $0x38] sm:$0xff] }
 0x1aa   :  { %2305 = vrcp.f32 %v389_v17  ;;  %v630_v15 = vadd.f32 %v629_v18, %v626_v21  ;;  %v631_v23 = vadd.f32 %v629_v18, %v627_v2  ;;  %v698_v18 = vpack.c.bf16 %v696_v40, %v695_v12  ;;  %v871_v17 = vld [vmem:[%s3679_s24 + $0x38] sm:$0xff] }
 0x1ab   :  { %772 = vperm.xlu1 %2298, %v753_v13   ;;  %778 = vperm.xlu0 %2297, %v755_v55   ;;  %v3683_v21 = vlaneseq  ;;  %v879_v13 = vld [vmem:[%s3679_s24 + $0x78] sm:$0xff] }
 0x1ac   :  { %v1955_v26 = vmul.f32 -1.442695, %v630_v15  ;;  %v1956_v46 = vmul.f32 -1.442695, %v631_v23  ;;  %v693_v15 = vld [vmem:[%s3682_s10] sm:$0xff]  ;;  %v694_v23 = vld [vmem:[%s3682_s10 + $0x8] sm:$0xff] }
 0x1ad   :  { %v3060_v2 = vand.u32 127, %v3683_v21 }
 0x1ae   :  { %2307 = vpow2.f32 %v1955_v26  ;;  %v760_v26 = vld [vmem:[%s3680_s4 + $0x40] sm:$0xff] }
 0x1af   :  { %2309 = vpow2.f32 %v1956_v46  ;;  %884 = vperm.xlu1 %2298, %v865_v49   ;;  %781 = vperm.xlu0 %2297, %v756_v28   ;;  %v697_v46 = vpack.c.bf16 %v694_v23, %v693_v15 }
 0x1b3   :  { %775 = vperm.xlu1 %2298, %v754_v7   ;;  %784 = vperm.xlu0 %2297, %v757_v56  }
 0x1b6   :  { %v2304_v35 = vpop.eup %2303 }
 0x1b7   :  { %v2306_v27 = vpop.eup %2305  ;;  %v394_v61 = vmul.f32 %v2304_v35, %v152_v4  ;;  %887 = vperm.xlu1 %2298, %v866_v52   ;;  %787 = vperm.xlu0 %2297, %v758_v34  }
 0x1b8   :  { %v395_v25 = vmul.f32 %v2306_v27, %v153_v59 }
 0x1ba   :  { %v396_v43 = vpack.c.bf16 %v395_v25, %v394_v61  ;;  %v873_v61 = vld [vmem:[%s3679_s24 + $0x48] sm:$0xff] }
 0x1bb   :  { %v2308_v62 = vpop.eup %2307  ;;  %890 = vperm.xlu1 %2298, %v867_v57   ;;  %790 = vperm.xlu0 %2297, %v759_v53   ;;  %v2315_v53 = vld [vmem:[%s3684_s29] sm:$0xff] }
 0x1bc   :  { %v2310_v38 = vpop.eup %2309  ;;  %2150 = vmatmul.mubr.msk.bf16.vlgmr.msra.gmra.mxu1 %vm398_vm2, %v396_v43  ;;  %v638_v29 = vadd.f32 1.0, %v2308_v62  ;;  %v762_v43 = vld [vmem:[%s3680_s4 + $0x50] sm:$0xff] }
 0x1bd   :  { %v639_v41 = vadd.f32 1.0, %v2310_v38  ;;  %2157 = vmatprep.mubr.msk.bf16.mxu1 %vm2416_vm1, %v3677_v5  ;;  %2154 = vmatpush3.bf16.msra.mxu1 %v449_v6  ;;  %v874_v38 = vld [vmem:[%s3679_s24 + $0x50] sm:$0xff] }
 0x1be   :  { %2311 = vrcp.f32 %v638_v29  ;;  %2155 = vmatprep.subr.bf16.mxu1 %v3677_v5 }
 0x1bf   :  { %2313 = vrcp.f32 %v639_v41  ;;  %893 = vperm.xlu1 %2298, %v868_v45   ;;  %793 = vperm.xlu0 %2297, %v760_v26   ;;  %v763_v41 = vld [vmem:[%s3680_s4 + $0x58] sm:$0xff] }
 0x1c1   :  { %2156 = vmatpush3.bf16.msra.mxu1 %v448_v33  ;;  %v765_v33 = vld [vmem:[%s3680_s4 + $0x68] sm:$0xff] }
 0x1c2   :  { %2167 = vmatprep.subr.bf16.mxu1 %v3677_v5 }
 0x1c3   :  { %896 = vperm.xlu1 %2298, %v869_v14  }
 0x1c7   :  { %899 = vperm.xlu1 %2298, %v870_v31  }
 0x1cb   :  { %v2312_v30 = vpop.eup %2311  ;;  %902 = vperm.xlu1 %2298, %v871_v17  }
 0x1cc   :  { %v2314_v60 = vpop.eup %2313  ;;  %v2977_v32 = vmul.f32 %v2312_v30, %v152_v4  ;;  %v872_v4 = vld [vmem:[%s3679_s24 + $0x40] sm:$0xff] }
 0x1cd   :  { %v645_v19 = vmul.f32 %v2314_v60, %v153_v59  ;;  %v761_v59 = vld [vmem:[%s3680_s4 + $0x48] sm:$0xff] }
 0x1ce   :  { %796 = vperm.xlu0 %2297, %v761_v59  }
 0x1cf   :  { %v646_v22 = vpack.c.bf16 %v645_v19, %v2977_v32  ;;  %905 = vperm.xlu1 %2298, %v872_v4   ;;  %v875_v32 = vld [vmem:[%s3679_s24 + $0x58] sm:$0xff]  ;;  %v764_v19 = vld [vmem:[%s3680_s4 + $0x60] sm:$0xff] }
 0x1d2   :  { %799 = vperm.xlu0 %2297, %v762_v43  }
 0x1d3   :  { %908 = vperm.xlu1 %2298, %v873_v61  }
 0x1d6   :  { %802 = vperm.xlu0 %2297, %v763_v41  }
 0x1d7   :  { %911 = vperm.xlu1 %2298, %v874_v38  }
 0x1da   :  { %805 = vperm.xlu0 %2297, %v764_v19  }
 0x1db   :  { %914 = vperm.xlu1 %2298, %v875_v32  }
 0x1de   :  { %808 = vperm.xlu0 %2297, %v765_v33  }
 0x1df   :  { %917 = vperm.xlu1 %2298, %v876_v20  }
 0x222   :  { %v3078_v35 = vpop.permute.xlu1 %881  ;;  %v770_v27 = vpop.permute.xlu0 %769 }
 0x223   :  { %vm816_vm4 = vcmp.eq.s32.totalorder %v3060_v2, %v770_v27  ;;  %vm928_vm12 = vcmp.eq.s32.totalorder %v3060_v2, %v3078_v35 }
 0x224   :  { %v3085_v25 = vsel %vm816_vm4, 1.0, %v3677_v5 }
 0x226   :  { %v773_v62 = vpop.permute.xlu1 %772  ;;  %v779_v60 = vpop.permute.xlu0 %778 }
 0x227   :  { %vm817_vm5 = vcmp.eq.s32.totalorder %v3060_v2, %v773_v62  ;;  %vm819_vm6 = vcmp.eq.s32.totalorder %v3060_v2, %v779_v60 }
 0x228   :  { %v3098_v29 = vsel %vm817_vm5, 1.0, %v3677_v5  ;;  %v3119_v6 = vsel %vm819_vm6, 1.0, %v3677_v5 }
 0x22a   :  { %v3105_v30 = vpop.permute.xlu1 %884  ;;  %v782_v44 = vpop.permute.xlu0 %781 }
 0x22b   :  { %vm820_vm8 = vcmp.eq.s32.totalorder %v3060_v2, %v782_v44  ;;  %vm929_vm15 = vcmp.eq.s32.totalorder %v3060_v2, %v3105_v30 }
 0x22c   :  { %v3126_v48 = vsel %vm820_vm8, 1.0, %v3677_v5  ;;  %v3205_v17 = vsel %vm929_vm15, 1.0, %v3677_v5 }
 0x27c   :  { %v436_v42 = vpop.f32.mrf.mxu1 }
 0x27e   :  { %v2151_v3 = vpop.f32.mrf.mxu1 }
 0x27f   :  { %v877_v3 = vld [vmem:[%s3679_s24 + $0x68] sm:$0xff] }
 0x280   :  { %v439_v51 = vpop.f32.mrf.mxu1  ;;  %920 = vperm.xlu1 %2298, %v877_v3  }
 0x281   :  { %v443_v36 = vpack.c.bf16 %v439_v51, %v436_v42  ;;  %v785_v42 = vpop.permute.xlu0 %784 }
 0x282   :  { %v2152_v24 = vpop.f32.mrf.mxu1  ;;  %vm821_vm9 = vcmp.eq.s32.totalorder %v3060_v2, %v785_v42 }
 0x283   :  { %2158 = vmatmul.mubr.msk.bf16.vlgmr.msra.gmra.mxu1 %vm457_vm3, %v443_v36  ;;  %v3142_v51 = vsel %vm821_vm9, 1.0, %v3677_v5  ;;  %v766_v36 = vld [vmem:[%s3680_s4 + $0x70] sm:$0xff] }
 0x284   :  { %2171 = vmatprep.mubr.msk.bf16.mxu1 %vm2416_vm1, %v3677_v5  ;;  %2168 = vmatpush3.bf16.msra.mxu1 %v698_v18 }
 0x285   :  { %2169 = vmatprep.subr.bf16.mxu1 %v3677_v5  ;;  %v788_v24 = vpop.permute.xlu0 %787  ;;  %811 = vperm.xlu0 %2297, %v766_v36  }
 0x286   :  { %vm822_vm10 = vcmp.eq.s32.totalorder %v3060_v2, %v788_v24  ;;  %923 = vperm.xlu1 %2298, %v878_v9  }
 0x287   :  { %v3154_v39 = vsel %vm822_vm10, 1.0, %v3677_v5 }
 0x288   :  { %2170 = vmatpush3.bf16.msra.mxu1 %v697_v46 }
 0x289   :  { %2203 = vmatprep.subr.mxu1 %v2547_v1  ;;  %814 = vperm.xlu0 %2297, %v767_v47   ;;  %v791_v52 = vpop.permute.xlu0 %790 }
 0x28a   :  { %926 = vperm.xlu1 %2298, %v879_v13   ;;  %vm823_vm11 = vcmp.eq.s32.totalorder %v3060_v2, %v791_v52 }
 0x28b   :  { %v3168_v57 = vsel %vm823_vm11, 1.0, %v3677_v5 }
 0x28d   :  { %v794_v14 = vpop.permute.xlu0 %793 }
 0x28e   :  { %vm824_vm13 = vcmp.eq.s32.totalorder %v3060_v2, %v794_v14 }
 0x343   :  { %v495_v37 = vpop.f32.mrf.mxu1 }
 0x344   :  { %v496_v50 = vadd.f32 %v1932_v58, %v495_v37 }
 0x345   :  { %v2159_v10 = vpop.f32.mrf.mxu1 }
 0x347   :  { %v498_v54 = vpop.f32.mrf.mxu1 }
 0x348   :  { %v499_v11 = vadd.f32 %v1932_v58, %v498_v54  ;;  %v3176_v58 = vsel %vm824_vm13, 1.0, %v3677_v5 }
 0x349   :  { %v2160_v16 = vpop.f32.mrf.mxu1 }
 0x34a   :  { %v647_v63 = vpack.c.bf16 %v499_v11, %v496_v50  ;;  %v3181_v50 = vsel %vm928_vm12, 1.0, %v3677_v5  ;;  %v797_v11 = vpop.permute.xlu0 %796 }
 0x34b   :  { %vm825_vm14 = vcmp.eq.s32.totalorder %v3060_v2, %v797_v11 }
 0x34c   :  { %2162 = vmatpush3.bf16.msra.mxu0 %v647_v63  ;;  %v3186_v12 = vsel %vm825_vm14, 1.0, %v3677_v5 }
 0x34d   :  { %2175 = vmatprep.subr.mxu0 %v2547_v1 }
 0x34e   :  { %v800_v40 = vpop.permute.xlu0 %799 }
 0x34f   :  { %2164 = vmatmul.mubr.msk.bf16.vlgmr.msra.gmra.mxu0 %vm398_vm2, %v646_v22  ;;  %v776_v22 = vpop.permute.xlu1 %775  ;;  %vm826_vm4 = vcmp.eq.s32.totalorder %v3060_v2, %v800_v40 }
 0x350   :  { %2176 = vmatpush3.msra.mxu0 %v2547_v1  ;;  %2179 = vmatprep.mubr.msk.f32.mxu0 %vm398_vm2, %v3085_v25  ;;  %vm818_vm7 = vcmp.eq.s32.totalorder %v3060_v2, %v776_v22  ;;  %v3202_v18 = vsel %vm826_vm4, 1.0, %v3677_v5 }
 0x351   :  { %2177 = vmatprep.subr.mxu0 %v2542_v0  ;;  %v3123_v8 = vsel %vm818_vm7, 1.0, %v3677_v5 }
 0x352   :  { %2178 = vmatpush3.msra.mxu0 %v2542_v0  ;;  %v803_v21 = vpop.permute.xlu0 %802 }
 0x353   :  { %v888_v55 = vpop.permute.xlu1 %887  ;;  %vm827_vm7 = vcmp.eq.s32.totalorder %v3060_v2, %v803_v21 }
 0x354   :  { %vm930_vm1 = vcmp.eq.s32.totalorder %v3060_v2, %v888_v55  ;;  %v3218_v23 = vsel %vm827_vm7, 1.0, %v3677_v5 }
 0x356   :  { %v806_v4 = vpop.permute.xlu0 %805 }
 0x357   :  { %2180 = vmatmul.mubr.msk.f32.vlgmr.msra.gmra.mxu0 %vm398_vm2, %v3098_v29  ;;  %v891_v49 = vpop.permute.xlu1 %890  ;;  %vm828_vm10 = vcmp.eq.s32.totalorder %v3060_v2, %v806_v4 }
 0x358   :  { %2182 = vmatprep.mubr.msk.f32.mxu0 %vm398_vm2, %v3123_v8  ;;  %vm931_vm5 = vcmp.eq.s32.totalorder %v3060_v2, %v891_v49  ;;  %v3236_v35 = vsel %vm828_vm10, 1.0, %v3677_v5 }
 0x359   :  { %v3221_v26 = vsel %vm931_vm5, 1.0, %v3677_v5 }
 0x35a   :  { %v809_v43 = vpop.permute.xlu0 %808 }
 0x35b   :  { %2183 = vmatmul.mubr.msk.f32.gmra.mxu0 %vm398_vm2, %v3119_v6  ;;  %v894_v28 = vpop.permute.xlu1 %893  ;;  %vm829_vm13 = vcmp.eq.s32.totalorder %v3060_v2, %v809_v43 }
 0x35c   :  { %2185 = vmatprep.mubr.msk.f32.mxu0 %vm398_vm2, %v3126_v48  ;;  %vm932_vm6 = vcmp.eq.s32.totalorder %v3060_v2, %v894_v28  ;;  %v3255_v38 = vsel %vm829_vm13, 1.0, %v3677_v5 }
 0x35d   :  { %v3228_v46 = vsel %vm932_vm6, 1.0, %v3677_v5 }
 0x35e   :  { %v812_v60 = vpop.permute.xlu0 %811 }
 0x35f   :  { %2186 = vmatmul.mubr.msk.f32.gmra.mxu0 %vm398_vm2, %v3142_v51  ;;  %v897_v7 = vpop.permute.xlu1 %896 }
 0x360   :  { %2188 = vmatprep.mubr.msk.f32.mxu0 %vm398_vm2, %v3154_v39  ;;  %vm933_vm8 = vcmp.eq.s32.totalorder %v3060_v2, %v897_v7 }
 0x361   :  { %v3239_v27 = vsel %vm933_vm8, 1.0, %v3677_v5 }
 0x362   :  { %v815_v20 = vpop.permute.xlu0 %814 }
 0x363   :  { %v900_v56 = vpop.permute.xlu1 %899  ;;  %2189 = vmatmul.mubr.msk.f32.gmra.mxu0 %vm398_vm2, %v3168_v57  ;;  %vm831_vm6 = vcmp.eq.s32.totalorder %v3060_v2, %v815_v20 }
 0x364   :  { %2191 = vmatprep.mubr.msk.f32.mxu0 %vm398_vm2, %v3176_v58  ;;  %vm934_vm9 = vcmp.eq.s32.totalorder %v3060_v2, %v900_v56  ;;  %v3291_v33 = vsel %vm831_vm6, 1.0, %v3677_v5 }
 0x365   :  { %v3246_v61 = vsel %vm934_vm9, 1.0, %v3677_v5 }
 0x367   :  { %v3165_v34 = vpop.permute.xlu1 %902  ;;  %2192 = vmatmul.mubr.msk.f32.gmra.mxu0 %vm398_vm2, %v3186_v12 }
 0x368   :  { %2194 = vmatprep.mubr.msk.f32.mxu0 %vm398_vm2, %v3202_v18  ;;  %vm935_vm11 = vcmp.eq.s32.totalorder %v3060_v2, %v3165_v34 }
 0x369   :  { %v3258_v41 = vsel %vm935_vm11, 1.0, %v3677_v5 }
 0x36b   :  { %v906_v37 = vpop.permute.xlu1 %905  ;;  %2195 = vmatmul.mubr.msk.f32.gmra.mxu0 %vm398_vm2, %v3218_v23 }
 0x36c   :  { %2197 = vmatprep.mubr.msk.f32.mxu0 %vm398_vm2, %v3236_v35  ;;  %vm936_vm12 = vcmp.eq.s32.totalorder %v3060_v2, %v906_v37 }
 0x36d   :  { %v3265_v30 = vsel %vm936_vm12, 1.0, %v3677_v5 }
 0x36f   :  { %v909_v63 = vpop.permute.xlu1 %908  ;;  %2198 = vmatmul.mubr.msk.f32.gmra.mxu0 %vm398_vm2, %v3255_v38 }
 0x370   :  { %vm937_vm14 = vcmp.eq.s32.totalorder %v3060_v2, %v909_v63 }
 0x371   :  { %v3276_v19 = vsel %vm937_vm14, 1.0, %v3677_v5 }
 0x40f   :  { %v685_v45 = vpop.f32.mrf.mxu0 }
 0x411   :  { %v2165_v31 = vpop.f32.mrf.mxu0 }
 0x413   :  { %v688_v10 = vpop.f32.mrf.mxu0 }
 0x414   :  { %v692_v54 = vpack.c.bf16 %v688_v10, %v685_v45 }
 0x415   :  { %v2166_v16 = vpop.f32.mrf.mxu0 }
 0x416   :  { %2172 = vmatmul.mubr.msk.bf16.vlgmr.msra.gmra.mxu1 %vm457_vm3, %v692_v54 }
 0x417   :  { %2204 = vmatpush3.msra.mxu1 %v2547_v1  ;;  %2207 = vmatprep.mubr.msk.f32.mxu1 %vm398_vm2, %v3181_v50  ;;  %v912_v1 = vpop.permute.xlu1 %911  ;;  %v2181_v55 = vpop.f32.mrf.mxu0 }
 0x418   :  { %2205 = vmatprep.subr.mxu1 %v2542_v0  ;;  %v3210_v0 = vsel %vm930_vm1, 1.0, %v3677_v5  ;;  %vm938_vm15 = vcmp.eq.s32.totalorder %v3060_v2, %v912_v1  ;;  %vm830_vm1 = vcmp.eq.s32.totalorder %v3060_v2, %v812_v60 }
 0x419   :  { %2206 = vmatpush3.msra.mxu1 %v2315_v53  ;;  %v3273_v32 = vsel %vm830_vm1, 1.0, %v3677_v5  ;;  %v3283_v44 = vsel %vm938_vm15, 1.0, %v3677_v5  ;;  %v1090_v7 = vpop.f32.mrf.mxu0 }
 0x41a   :  { %2200 = vmatprep.mubr.msk.f32.mxu0 %vm398_vm2, %v3273_v32 }
 0x41b   :  { %v915_v15 = vpop.permute.xlu1 %914  ;;  %2201 = vmatmul.mubr.msk.f32.gmra.mxu0 %vm398_vm2, %v3291_v33  ;;  %v2184_v14 = vpop.f32.mrf.mxu0 }
 0x41c   :  { %vm939_vm4 = vcmp.eq.s32.totalorder %v3060_v2, %v915_v15  ;;  %2235 = vmatprep.mubr.msk.f32.mxu0 %vm398_vm2, %v3085_v25 }
 0x41d   :  { %v3294_v42 = vsel %vm939_vm4, 1.0, %v3677_v5  ;;  %v1100_v54 = vpop.f32.mrf.mxu0 }
 0x41e   :  { %2208 = vmatmul.mubr.msk.f32.vlgmr.msra.gmra.mxu1 %vm398_vm2, %v3205_v17 }
 0x41f   :  { %2210 = vmatprep.mubr.msk.f32.mxu1 %vm398_vm2, %v3210_v0  ;;  %v918_v59 = vpop.permute.xlu1 %917  ;;  %v2187_v40 = vpop.f32.mrf.mxu0 }
 0x420   :  { %vm940_vm5 = vcmp.eq.s32.totalorder %v3060_v2, %v918_v59 }
 0x421   :  { %v3301_v3 = vsel %vm940_vm5, 1.0, %v3677_v5 }
 0x422   :  { %2211 = vmatmul.mubr.msk.f32.gmra.mxu1 %vm398_vm2, %v3221_v26 }
 0x423   :  { %2213 = vmatprep.mubr.msk.f32.mxu1 %vm398_vm2, %v3228_v46  ;;  %v921_v62 = vpop.permute.xlu1 %920 }
 0x424   :  { %vm941_vm7 = vcmp.eq.s32.totalorder %v3060_v2, %v921_v62 }
 0x425   :  { %v3310_v24 = vsel %vm941_vm7, 1.0, %v3677_v5 }
 0x426   :  { %2214 = vmatmul.mubr.msk.f32.gmra.mxu1 %vm398_vm2, %v3239_v27 }
 0x427   :  { %2216 = vmatprep.mubr.msk.f32.mxu1 %vm398_vm2, %v3246_v61  ;;  %v924_v22 = vpop.permute.xlu1 %923 }
 0x428   :  { %vm942_vm8 = vcmp.eq.s32.totalorder %v3060_v2, %v924_v22 }
 0x429   :  { %v3315_v9 = vsel %vm942_vm8, 1.0, %v3677_v5 }
 0x42a   :  { %2217 = vmatmul.mubr.msk.f32.gmra.mxu1 %vm398_vm2, %v3258_v41 }
 0x42b   :  { %2219 = vmatprep.mubr.msk.f32.mxu1 %vm398_vm2, %v3265_v30  ;;  %v927_v36 = vpop.permute.xlu1 %926 }
 0x42c   :  { %vm943_vm9 = vcmp.eq.s32.totalorder %v3060_v2, %v927_v36  ;;  %v1958_v2 = vld [vmem:[%s3685_s22] ss:$0 sm:$0xff] }
 0x42d   :  { %v3321_v25 = vsel %vm943_vm9, 1.0, %v3677_v5 }
 0x42e   :  { %2220 = vmatmul.mubr.msk.f32.gmra.mxu1 %vm398_vm2, %v3276_v19 }
 0x42f   :  { %2222 = vmatprep.mubr.msk.f32.mxu1 %vm398_vm2, %v3283_v44 }
 0x432   :  { %2223 = vmatmul.mubr.msk.f32.gmra.mxu1 %vm398_vm2, %v3294_v42 }
 0x433   :  { %2225 = vmatprep.mubr.msk.f32.mxu1 %vm398_vm2, %v3301_v3 }
 0x436   :  { %2226 = vmatmul.mubr.msk.f32.gmra.mxu1 %vm398_vm2, %v3310_v24 }
 0x437   :  { %2228 = vmatprep.mubr.msk.f32.mxu1 %vm398_vm2, %v3315_v9 }
 0x43a   :  { %2229 = vmatmul.mubr.msk.f32.gmra.mxu1 %vm398_vm2, %v3321_v25 }
 0x43b   :  { %2263 = vmatprep.mubr.msk.f32.mxu1 %vm398_vm2, %v3181_v50 }
 0x4d6   :  { %v743_v47 = vpop.f32.mrf.mxu1 }
 0x4d7   :  { %v744_v56 = vadd.f32 %v1958_v2, %v743_v47 }
 0x4d8   :  { %v2173_v13 = vpop.f32.mrf.mxu1 }
 0x4da   :  { %v746_v49 = vpop.f32.mrf.mxu1 }
 0x4db   :  { %v747_v28 = vadd.f32 %v1958_v2, %v746_v49 }
 0x4dc   :  { %v2174_v5 = vpop.f32.mrf.mxu1 }
 0x4dd   :  { %2231 = vmatprep.subr.mxu0 %v747_v28  ;;  %2259 = vmatprep.subr.mxu1 %v747_v28 }
 0x4de   :  { %2232 = vmatpush3.msra.mxu0 %v747_v28  ;;  %2260 = vmatpush3.msra.mxu1 %v747_v28  ;;  %v2209_v52 = vpop.f32.mrf.mxu1 }
 0x4df   :  { %2233 = vmatprep.subr.mxu0 %v744_v56  ;;  %2261 = vmatprep.subr.mxu1 %v744_v56  ;;  %v1653_v34 = vsub.f32 %v2181_v55, %v2209_v52 }
 0x4e0   :  { %2234 = vmatpush3.msra.mxu0 %v744_v56  ;;  %2262 = vmatpush3.msra.mxu1 %v744_v56  ;;  %v1283_v45 = vpop.f32.mrf.mxu1 }
 0x4e1   :  { %2236 = vmatmul.mubr.msk.f32.vlgmr.msra.gmra.mxu0 %vm398_vm2, %v3098_v29  ;;  %2264 = vmatmul.mubr.msk.f32.vlgmr.msra.gmra.mxu1 %vm398_vm2, %v3205_v17  ;;  %v1669_v31 = vmul.f32 %v1653_v34, %v1653_v34  ;;  %v1652_v37 = vsub.f32 %v1090_v7, %v1283_v45  ;;  %v1110_v17 = vpop.f32.mrf.mxu0 }
 0x4e2   :  { %2238 = vmatprep.mubr.msk.f32.mxu0 %vm398_vm2, %v3123_v8  ;;  %2266 = vmatprep.mubr.msk.f32.mxu1 %vm398_vm2, %v3210_v0  ;;  %v2212_v10 = vpop.f32.mrf.mxu1 }
 0x4e3   :  { %v1668_v50 = vmul.f32 %v1652_v37, %v1652_v37  ;;  %v1655_v11 = vsub.f32 %v2184_v14, %v2212_v10  ;;  %v1687_v16 = vsel %vm155_vm0, %v1669_v31, 0.0 }
 0x4e4   :  { %v1293_v63 = vpop.f32.mrf.mxu1  ;;  %1688 = vadd.xlane.f32.xlu0 %v1687_v16 }
 0x4e5   :  { %2239 = vmatmul.mubr.msk.f32.gmra.mxu0 %vm398_vm2, %v3119_v6  ;;  %2267 = vmatmul.mubr.msk.f32.gmra.mxu1 %vm398_vm2, %v3221_v26  ;;  %v1671_v29 = vmul.f32 %v1655_v11, %v1655_v11  ;;  %v1654_v8 = vsub.f32 %v1100_v54, %v1293_v63  ;;  %v1684_v53 = vsel %vm155_vm0, %v1668_v50, 0.0 }
 0x4e6   :  { %2241 = vmatprep.mubr.msk.f32.mxu0 %vm398_vm2, %v3126_v48  ;;  %2269 = vmatprep.mubr.msk.f32.mxu1 %vm398_vm2, %v3228_v46  ;;  %v2215_v1 = vpop.f32.mrf.mxu1  ;;  %v2190_v46 = vpop.f32.mrf.mxu0 }
 0x4e7   :  { %v1670_v0 = vmul.f32 %v1654_v8, %v1654_v8  ;;  %v1693_v21 = vsel %vm155_vm0, %v1671_v29, 0.0  ;;  %v1657_v15 = vsub.f32 %v2187_v40, %v2215_v1 }
 0x4e8   :  { %1694 = vadd.xlane.f32.xlu1 %v1693_v21  ;;  %v1303_v6 = vpop.f32.mrf.mxu1  ;;  %1685 = vadd.xlane.f32.xlu0 %v1684_v53 }
 0x4e9   :  { %2242 = vmatmul.mubr.msk.f32.gmra.mxu0 %vm398_vm2, %v3142_v51  ;;  %2270 = vmatmul.mubr.msk.f32.gmra.mxu1 %vm398_vm2, %v3239_v27  ;;  %v1673_v26 = vmul.f32 %v1657_v15, %v1657_v15  ;;  %v1690_v48 = vsel %vm155_vm0, %v1670_v0, 0.0  ;;  %v1656_v4 = vsub.f32 %v1110_v17, %v1303_v6 }
 0x4ea   :  { %2244 = vmatprep.mubr.msk.f32.mxu0 %vm398_vm2, %v3154_v39  ;;  %2272 = vmatprep.mubr.msk.f32.mxu1 %vm398_vm2, %v3246_v61  ;;  %v2218_v59 = vpop.f32.mrf.mxu1  ;;  %v1120_v39 = vpop.f32.mrf.mxu0 }
 0x4eb   :  { %v1672_v51 = vmul.f32 %v1656_v4, %v1656_v4  ;;  %v1699_v27 = vsel %vm155_vm0, %v1673_v26, 0.0  ;;  %v1659_v43 = vsub.f32 %v2190_v46, %v2218_v59 }
 0x4ec   :  { %1691 = vadd.xlane.f32.xlu1 %v1690_v48  ;;  %v1313_v61 = vpop.f32.mrf.mxu1 }
 0x4ed   :  { %2245 = vmatmul.mubr.msk.f32.gmra.mxu0 %vm398_vm2, %v3168_v57  ;;  %2273 = vmatmul.mubr.msk.f32.gmra.mxu1 %vm398_vm2, %v3258_v41  ;;  %v1675_v57 = vmul.f32 %v1659_v43, %v1659_v43  ;;  %v1696_v62 = vsel %vm155_vm0, %v1672_v51, 0.0  ;;  %v1658_v41 = vsub.f32 %v1120_v39, %v1313_v61 }
 0x4ee   :  { %2247 = vmatprep.mubr.msk.f32.mxu0 %vm398_vm2, %v3176_v58  ;;  %2275 = vmatprep.mubr.msk.f32.mxu1 %vm398_vm2, %v3265_v30  ;;  %v2193_v58 = vpop.f32.mrf.mxu0  ;;  %v2221_v30 = vpop.f32.mrf.mxu1 }
 0x4ef   :  { %v1705_v60 = vsel %vm155_vm0, %v1675_v57, 0.0 }
 0x4f0   :  { %1700 = vadd.xlane.f32.xlu1 %v1699_v27  ;;  %v1323_v22 = vpop.f32.mrf.mxu1 }
 0x4f1   :  { %2248 = vmatmul.mubr.msk.f32.gmra.mxu0 %vm398_vm2, %v3186_v12  ;;  %2276 = vmatmul.mubr.msk.f32.gmra.mxu1 %vm398_vm2, %v3276_v19  ;;  %v1674_v12 = vmul.f32 %v1658_v41, %v1658_v41  ;;  %v1661_v19 = vsub.f32 %v2193_v58, %v2221_v30 }
 0x4f2   :  { %2250 = vmatprep.mubr.msk.f32.mxu0 %vm398_vm2, %v3202_v18  ;;  %2278 = vmatprep.mubr.msk.f32.mxu1 %vm398_vm2, %v3283_v44  ;;  %v1130_v18 = vpop.f32.mrf.mxu0 }
 0x4f3   :  { %v1702_v44 = vsel %vm155_vm0, %v1674_v12, 0.0  ;;  %v1660_v20 = vsub.f32 %v1130_v18, %v1323_v22 }
 0x4f4   :  { %1697 = vadd.xlane.f32.xlu1 %v1696_v62 }
 0x4f5   :  { %2251 = vmatmul.mubr.msk.f32.gmra.mxu0 %vm398_vm2, %v3218_v23  ;;  %2279 = vmatmul.mubr.msk.f32.gmra.mxu1 %vm398_vm2, %v3294_v42  ;;  %v1677_v23 = vmul.f32 %v1661_v19, %v1661_v19  ;;  %v2224_v42 = vpop.f32.mrf.mxu1 }
 0x4f6   :  { %2253 = vmatprep.mubr.msk.f32.mxu0 %vm398_vm2, %v3236_v35  ;;  %2281 = vmatprep.mubr.msk.f32.mxu1 %vm398_vm2, %v3301_v3  ;;  %v2196_v35 = vpop.f32.mrf.mxu0 }
 0x4f7   :  { %v1711_v3 = vsel %vm155_vm0, %v1677_v23, 0.0  ;;  %v1663_v36 = vsub.f32 %v2196_v35, %v2224_v42  ;;  %v1333_v47 = vpop.f32.mrf.mxu1 }
 0x4f8   :  { %1706 = vadd.xlane.f32.xlu1 %v1705_v60 }
 0x4f9   :  { %2254 = vmatmul.mubr.msk.f32.gmra.mxu0 %vm398_vm2, %v3255_v38  ;;  %2282 = vmatmul.mubr.msk.f32.gmra.mxu1 %vm398_vm2, %v3310_v24  ;;  %v1676_v38 = vmul.f32 %v1660_v20, %v1660_v20  ;;  %v1140_v24 = vpop.f32.mrf.mxu0  ;;  %v2227_v2 = vpop.f32.mrf.mxu1 }
 0x4fa   :  { %2256 = vmatprep.mubr.msk.f32.mxu0 %vm398_vm2, %v3273_v32  ;;  %2284 = vmatprep.mubr.msk.f32.mxu1 %vm398_vm2, %v3315_v9  ;;  %v1679_v32 = vmul.f32 %v1663_v36, %v1663_v36  ;;  %v1662_v9 = vsub.f32 %v1140_v24, %v1333_v47 }
 0x4fb   :  { %v1708_v13 = vsel %vm155_vm0, %v1676_v38, 0.0  ;;  %v2199_v55 = vpop.f32.mrf.mxu0 }
 0x4fc   :  { %1703 = vadd.xlane.f32.xlu1 %v1702_v44  ;;  %v1678_v49 = vmul.f32 %v1662_v9, %v1662_v9  ;;  %v1665_v28 = vsub.f32 %v2199_v55, %v2227_v2 }
 0x4fd   :  { %2257 = vmatmul.mubr.msk.f32.gmra.mxu0 %vm398_vm2, %v3291_v33  ;;  %2285 = vmatmul.mubr.msk.f32.gmra.mxu1 %vm398_vm2, %v3321_v25  ;;  %v1717_v33 = vsel %vm155_vm0, %v1679_v32, 0.0  ;;  %v1150_v5 = vpop.f32.mrf.mxu0  ;;  %v1343_v25 = vpop.f32.mrf.mxu1 }
 0x4fe   :  { %v1681_v7 = vmul.f32 %v1665_v28, %v1665_v28  ;;  %v1714_v56 = vsel %vm155_vm0, %v1678_v49, 0.0  ;;  %v1664_v52 = vsub.f32 %v1150_v5, %v1343_v25 }
 0x4ff   :  { %v2202_v34 = vpop.f32.mrf.mxu0  ;;  %v2230_v45 = vpop.f32.mrf.mxu1 }
 0x500   :  { %1712 = vadd.xlane.f32.xlu1 %v1711_v3  ;;  %v1680_v14 = vmul.f32 %v1664_v52, %v1664_v52  ;;  %v1723_v31 = vsel %vm155_vm0, %v1681_v7, 0.0  ;;  %v1667_v37 = vsub.f32 %v2202_v34, %v2230_v45 }
 0x501   :  { %v1160_v10 = vpop.f32.mrf.mxu0  ;;  %v1353_v54 = vpop.f32.mrf.mxu1 }
 0x502   :  { %v1683_v50 = vmul.f32 %v1667_v37, %v1667_v37  ;;  %v1720_v11 = vsel %vm155_vm0, %v1680_v14, 0.0  ;;  %v1666_v16 = vsub.f32 %v1160_v10, %v1353_v54 }
 0x504   :  { %1709 = vadd.xlane.f32.xlu1 %v1708_v13  ;;  %v1682_v63 = vmul.f32 %v1666_v16, %v1666_v16  ;;  %v1729_v40 = vsel %vm155_vm0, %v1683_v50, 0.0 }
 0x506   :  { %v1726_v29 = vsel %vm155_vm0, %v1682_v63, 0.0 }
 0x508   :  { %1718 = vadd.xlane.f32.xlu1 %v1717_v33 }
 0x50c   :  { %1715 = vadd.xlane.f32.xlu1 %v1714_v56 }
 0x510   :  { %1724 = vadd.xlane.f32.xlu1 %v1723_v31 }
 0x514   :  { %1721 = vadd.xlane.f32.xlu1 %v1720_v11 }
 0x518   :  { %1730 = vadd.xlane.f32.xlu1 %v1729_v40 }
 0x51c   :  { %1727 = vadd.xlane.f32.xlu1 %v1726_v29 }
 0x5a1   :  { %v2237_v8 = vpop.f32.mrf.mxu0  ;;  %v2265_v53 = vpop.f32.mrf.mxu1 }
 0x5a2   :  { %v1733_v1 = vmul.f32 %v2265_v53, %v2237_v8  ;;  %v1695_v8 = vpop.xlane.xlu1 %1694 }
 0x5a3   :  { %v1428_v17 = vpop.f32.mrf.mxu0  ;;  %v1573_v0 = vpop.f32.mrf.mxu1 }
 0x5a4   :  { %v1732_v21 = vmul.f32 %v1573_v0, %v1428_v17  ;;  %v1751_v15 = vsel %vm457_vm3, %v1733_v1, 0.0 }
 0x5a5   :  { %v2268_v6 = vpop.f32.mrf.mxu1  ;;  %1752 = vadd.xlane.f32.xlu0 %v1751_v15  ;;  %v2240_v26 = vpop.f32.mrf.mxu0 }
 0x5a6   :  { %v1735_v48 = vmul.f32 %v2268_v6, %v2240_v26  ;;  %v1748_v4 = vsel %vm457_vm3, %v1732_v21, 0.0  ;;  %v1692_v53 = vpop.xlane.xlu1 %1691 }
 0x5a7   :  { %v1583_v46 = vpop.f32.mrf.mxu1  ;;  %1749 = vadd.xlane.f32.xlu1 %v1748_v4  ;;  %v1438_v59 = vpop.f32.mrf.mxu0 }
 0x5a8   :  { %v1734_v51 = vmul.f32 %v1583_v46, %v1438_v59  ;;  %v1757_v27 = vsel %vm457_vm3, %v1735_v48, 0.0  ;;  %v1689_v59 = vpop.xlane.xlu0 %1688 }
 0x5a9   :  { %v2271_v43 = vpop.f32.mrf.mxu1  ;;  %1758 = vadd.xlane.f32.xlu0 %v1757_v27  ;;  %v2243_v39 = vpop.f32.mrf.mxu0 }
 0x5aa   :  { %v1737_v62 = vmul.f32 %v2271_v43, %v2243_v39  ;;  %v1754_v41 = vsel %vm457_vm3, %v1734_v51, 0.0  ;;  %v1701_v1 = vpop.xlane.xlu1 %1700  ;;  %v3438_v39 = vstv %s2056_s2 }
 0x5ab   :  { %v1448_v61 = vpop.f32.mrf.mxu0  ;;  %v1593_v57 = vpop.f32.mrf.mxu1 }
 0x5ac   :  { %v1736_v12 = vmul.f32 %v1593_v57, %v1448_v61  ;;  %v1763_v60 = vsel %vm457_vm3, %v1737_v62, 0.0  ;;  %v1686_v27 = vpop.xlane.xlu0 %1685  ;;  %v3440_v61 = vstv %s1796_s27 }
 0x5ad   :  { %v2274_v58 = vpop.f32.mrf.mxu1  ;;  %1755 = vadd.xlane.f32.xlu0 %v1754_v41  ;;  %v2246_v30 = vpop.f32.mrf.mxu0  ;;  %v1816_v41 = vmul.f32 %v3438_v39, %v1686_v27 }
 0x5ae   :  { %v1739_v22 = vmul.f32 %v2274_v58, %v2246_v30  ;;  %v1760_v23 = vsel %vm457_vm3, %v1736_v12, 0.0  ;;  %v1698_v17 = vpop.xlane.xlu1 %1697 }
 0x5af   :  { %v1458_v19 = vpop.f32.mrf.mxu0  ;;  %v1603_v18 = vpop.f32.mrf.mxu1 }
 0x5b0   :  { %v1738_v35 = vmul.f32 %v1603_v18, %v1458_v19  ;;  %v1769_v42 = vsel %vm457_vm3, %v1739_v22, 0.0  ;;  %v3449_v18 = vstv %s3686_s11 }
 0x5b1   :  { %1764 = vadd.xlane.f32.xlu0 %v1763_v60  ;;  %v2277_v44 = vpop.f32.mrf.mxu1  ;;  %v2249_v20 = vpop.f32.mrf.mxu0  ;;  %v1817_v60 = vmul.f32 %v3438_v39, %v1689_v59 }
 0x5b2   :  { %v1741_v36 = vmul.f32 %v2277_v44, %v2249_v20  ;;  %v1766_v24 = vsel %vm457_vm3, %v1738_v35, 0.0  ;;  %v1707_v0 = vpop.xlane.xlu1 %1706  ;;  %v1818_v20 = vmul.f32 %v3438_v39, %v1692_v53 }
 0x5b3   :  { %v1468_v38 = vpop.f32.mrf.mxu0  ;;  %v1613_v3 = vpop.f32.mrf.mxu1 }
 0x5b4   :  { %v1740_v13 = vmul.f32 %v1613_v3, %v1468_v38  ;;  %v1775_v9 = vsel %vm457_vm3, %v1741_v36, 0.0 }
 0x5b5   :  { %1761 = vadd.xlane.f32.xlu0 %v1760_v23  ;;  %v2280_v47 = vpop.f32.mrf.mxu1  ;;  %v2252_v32 = vpop.f32.mrf.mxu0 }
 0x5b6   :  { %v1743_v49 = vmul.f32 %v2280_v47, %v2252_v32  ;;  %v1772_v33 = vsel %vm457_vm3, %v1740_v13, 0.0  ;;  %v1704_v21 = vpop.xlane.xlu1 %1703 }
 0x5b7   :  { %v1478_v55 = vpop.f32.mrf.mxu0  ;;  %v1623_v2 = vpop.f32.mrf.mxu1 }
 0x5b8   :  { %v1742_v25 = vmul.f32 %v1623_v2, %v1478_v55  ;;  %v1781_v7 = vsel %vm457_vm3, %v1743_v49, 0.0 }
 0x5b9   :  { %1770 = vadd.xlane.f32.xlu0 %v1769_v42  ;;  %v2283_v28 = vpop.f32.mrf.mxu1  ;;  %v2255_v5 = vpop.f32.mrf.mxu0 }
 0x5ba   :  { %v1745_v34 = vmul.f32 %v2283_v28, %v2255_v5  ;;  %v1778_v45 = vsel %vm457_vm3, %v1742_v25, 0.0  ;;  %v3424_v15 = vpop.xlane.xlu1 %1712  ;;  %v1821_v5 = vmul.f32 %v3438_v39, %v1701_v1 }
 0x5bb   :  { %v1488_v56 = vpop.f32.mrf.mxu0  ;;  %v1633_v52 = vpop.f32.mrf.mxu1  ;;  %v1825_v1 = vmul.f32 %v3438_v39, %v3424_v15 }
 0x5bc   :  { %v1744_v37 = vmul.f32 %v1633_v52, %v1488_v56  ;;  %v1787_v10 = vsel %vm457_vm3, %v1745_v34, 0.0  ;;  %v1822_v52 = vmul.f32 %v3438_v39, %v1704_v21 }
 0x5bd   :  { %1767 = vadd.xlane.f32.xlu0 %v1766_v24  ;;  %v2286_v14 = vpop.f32.mrf.mxu1  ;;  %v2258_v31 = vpop.f32.mrf.mxu0  ;;  %v1819_v24 = vmul.f32 %v3438_v39, %v1695_v8 }
 0x5be   :  { %v1784_v16 = vsel %vm457_vm3, %v1744_v37, 0.0  ;;  %v1747_v63 = vmul.f32 %v2286_v14, %v2258_v31  ;;  %v1710_v6 = vpop.xlane.xlu1 %1709 }
 0x5bf   :  { %v1498_v54 = vpop.f32.mrf.mxu0  ;;  %v1643_v50 = vpop.f32.mrf.mxu1 }
 0x5c0   :  { %v1746_v11 = vmul.f32 %v1643_v50, %v1498_v54  ;;  %v1793_v29 = vsel %vm457_vm3, %v1747_v63, 0.0 }
 0x5c1   :  { %1776 = vadd.xlane.f32.xlu0 %v1775_v9  ;;  %v1820_v9 = vmul.f32 %v3438_v39, %v1698_v17 }
 0x5c2   :  { %v1790_v40 = vsel %vm457_vm3, %v1746_v11, 0.0  ;;  %v3426_v26 = vpop.xlane.xlu1 %1718 }
 0x5c3   :  { %v1827_v15 = vmul.f32 %v3438_v39, %v3426_v26 }
 0x5c5   :  { %1773 = vadd.xlane.f32.xlu0 %v1772_v33 }
 0x5c6   :  { %v3428_v48 = vpop.xlane.xlu1 %1715 }
 0x5c9   :  { %1782 = vadd.xlane.f32.xlu0 %v1781_v7 }
 0x5ca   :  { %v3430_v4 = vpop.xlane.xlu1 %1724 }
 0x5cb   :  { %v1829_v26 = vmul.f32 %v3438_v39, %v3430_v4 }
 0x5cd   :  { %1779 = vadd.xlane.f32.xlu0 %v1778_v45 }
 0x5ce   :  { %v3432_v46 = vpop.xlane.xlu1 %1721 }
 0x5d1   :  { %1788 = vadd.xlane.f32.xlu0 %v1787_v10  ;;  %v1823_v10 = vmul.f32 %v3438_v39, %v1707_v0 }
 0x5d2   :  { %v3434_v51 = vpop.xlane.xlu1 %1730 }
 0x5d5   :  { %1785 = vadd.xlane.f32.xlu0 %v1784_v16  ;;  %v1824_v16 = vmul.f32 %v3438_v39, %v1710_v6  ;;  %v1826_v6 = vmul.f32 %v3438_v39, %v3428_v48  ;;  %v1828_v48 = vmul.f32 %v3438_v39, %v3432_v46 }
 0x5d6   :  { %v3436_v43 = vpop.xlane.xlu1 %1727 }
 0x5d7   :  { %v1830_v46 = vmul.f32 %v3438_v39, %v3436_v43 }
 0x5d9   :  { %1791 = vadd.xlane.f32.xlu0 %v1790_v40 }
 0x5dd   :  { %1794 = vadd.xlane.f32.xlu0 %v1793_v29 }
 0x62e   :  { %v1753_v57 = vpop.xlane.xlu0 %1752 }
 0x62f   :  { %v1799_v58 = vmul.f32 %v3440_v61, %v1753_v57 }
 0x630   :  { %v1750_v62 = vpop.xlane.xlu1 %1749 }
 0x631   :  { %v1798_v30 = vmul.f32 %v3440_v61, %v1750_v62  ;;  %v1833_v22 = vadd.f32 %v1817_v60, %v1799_v58 }
 0x632   :  { %v1759_v12 = vpop.xlane.xlu0 %1758 }
 0x633   :  { %v1832_v19 = vadd.f32 %v1816_v41, %v1798_v30  ;;  %v1851_v42 = vadd.f32 %v3449_v18, %v1833_v22  ;;  %v1801_v38 = vmul.f32 %v3440_v61, %v1759_v12 }
 0x635   :  { %v1850_v23 = vadd.f32 %v3449_v18, %v1832_v19  ;;  %v1835_v47 = vadd.f32 %v1819_v24, %v1801_v38 }
 0x636   :  { %v1756_v44 = vpop.xlane.xlu0 %1755 }
 0x637   :  { %v1800_v35 = vmul.f32 %v3440_v61, %v1756_v44  ;;  %1866 = vxpose.xlu1.b32.start [1/16] (narrow) %v1850_v23, 8  ;;  %v1853_v2 = vadd.f32 %v3449_v18, %v1835_v47  ;;  %v1831_v47 = vmul.f32 %v3438_v39, %v3434_v51 }
 0x639   :  { %v1834_v3 = vadd.f32 %v1818_v20, %v1800_v35 }
 0x63a   :  { %v1765_v36 = vpop.xlane.xlu0 %1764 }
 0x63b   :  { %1867 = vxpose.xlu1.b32.cont [2/16] (narrow) %v1851_v42, 8  ;;  %v1852_v32 = vadd.f32 %v3449_v18, %v1834_v3  ;;  %v1803_v49 = vmul.f32 %v3440_v61, %v1765_v36 }
 0x63d   :  { %v1837_v25 = vadd.f32 %v1821_v5, %v1803_v49 }
 0x63e   :  { %v1762_v13 = vpop.xlane.xlu0 %1761 }
 0x63f   :  { %v1802_v55 = vmul.f32 %v3440_v61, %v1762_v13  ;;  %1868 = vxpose.xlu1.b32.cont [3/16] (narrow) %v1852_v32, 8  ;;  %v1855_v45 = vadd.f32 %v3449_v18, %v1837_v25 }
 0x641   :  { %v1836_v33 = vadd.f32 %v1820_v9, %v1802_v55 }
 0x642   :  { %v1771_v28 = vpop.xlane.xlu0 %1770 }
 0x643   :  { %1869 = vxpose.xlu1.b32.cont [4/16] (narrow) %v1853_v2, 8  ;;  %v1854_v7 = vadd.f32 %v3449_v18, %v1836_v33  ;;  %v1805_v14 = vmul.f32 %v3440_v61, %v1771_v28 }
 0x645   :  { %v1839_v54 = vadd.f32 %v1823_v10, %v1805_v14 }
 0x646   :  { %v1768_v56 = vpop.xlane.xlu0 %1767 }
 0x647   :  { %v1804_v34 = vmul.f32 %v3440_v61, %v1768_v56  ;;  %1870 = vxpose.xlu1.b32.cont [5/16] (narrow) %v1854_v7, 8  ;;  %v1857_v40 = vadd.f32 %v3449_v18, %v1839_v54 }
 0x649   :  { %v1838_v31 = vadd.f32 %v1822_v52, %v1804_v34 }
 0x64a   :  { %v1777_v37 = vpop.xlane.xlu0 %1776 }
 0x64b   :  { %1871 = vxpose.xlu1.b32.cont [6/16] (narrow) %v1855_v45, 8  ;;  %v1856_v50 = vadd.f32 %v3449_v18, %v1838_v31  ;;  %v1807_v29 = vmul.f32 %v3440_v61, %v1777_v37 }
 0x64d   :  { %v1841_v17 = vadd.f32 %v1825_v1, %v1807_v29 }
 0x64e   :  { %v1774_v11 = vpop.xlane.xlu0 %1773 }
 0x64f   :  { %v1806_v63 = vmul.f32 %v3440_v61, %v1774_v11  ;;  %1872 = vxpose.xlu1.b32.cont [7/16] (narrow) %v1856_v50, 8  ;;  %v1859_v27 = vadd.f32 %v3449_v18, %v1841_v17 }
 0x651   :  { %v1840_v8 = vadd.f32 %v1824_v16, %v1806_v63 }
 0x652   :  { %v1783_v53 = vpop.xlane.xlu0 %1782 }
 0x653   :  { %1873 = vxpose.xlu1.b32.cont [8/16] (narrow) %v1857_v40, 8  ;;  %v1858_v0 = vadd.f32 %v3449_v18, %v1840_v8  ;;  %v1809_v57 = vmul.f32 %v3440_v61, %v1783_v53 }
 0x655   :  { %v1843_v58 = vadd.f32 %v1827_v15, %v1809_v57 }
 0x656   :  { %v1780_v21 = vpop.xlane.xlu0 %1779 }
 0x657   :  { %v1808_v59 = vmul.f32 %v3440_v61, %v1780_v21  ;;  %1874 = vxpose.xlu1.b32.cont [9/16] (narrow) %v1858_v0, 8  ;;  %v1861_v19 = vadd.f32 %v3449_v18, %v1843_v58 }
 0x659   :  { %v1842_v62 = vadd.f32 %v1826_v6, %v1808_v59 }
 0x65a   :  { %v1789_v41 = vpop.xlane.xlu0 %1788 }
 0x65b   :  { %1875 = vxpose.xlu1.b32.cont [10/16] (narrow) %v1859_v27, 8  ;;  %v1860_v30 = vadd.f32 %v3449_v18, %v1842_v62  ;;  %v1811_v22 = vmul.f32 %v3440_v61, %v1789_v41 }
 0x65d   :  { %v1845_v20 = vadd.f32 %v1829_v26, %v1811_v22 }
 0x65e   :  { %v1786_v12 = vpop.xlane.xlu0 %1785 }
 0x65f   :  { %v1810_v60 = vmul.f32 %v3440_v61, %v1786_v12  ;;  %1876 = vxpose.xlu1.b32.cont [11/16] (narrow) %v1860_v30, 8  ;;  %v1863_v3 = vadd.f32 %v3449_v18, %v1845_v20 }
 0x661   :  { %v1844_v23 = vadd.f32 %v1828_v48, %v1810_v60 }
 0x662   :  { %v1792_v44 = vpop.xlane.xlu0 %1791 }
 0x663   :  { %1877 = vxpose.xlu1.b32.cont [12/16] (narrow) %v1861_v19, 8  ;;  %v1862_v35 = vadd.f32 %v3449_v18, %v1844_v23  ;;  %v1812_v42 = vmul.f32 %v3440_v61, %v1792_v44 }
 0x665   :  { %v1846_v36 = vadd.f32 %v1830_v46, %v1812_v42 }
 0x666   :  { %v1795_v38 = vpop.xlane.xlu0 %1794 }
 0x667   :  { %1878 = vxpose.xlu1.b32.cont [13/16] (narrow) %v1862_v35, 8  ;;  %v1813_v24 = vmul.f32 %v3440_v61, %v1795_v38  ;;  %v1864_v4 = vadd.f32 %v3449_v18, %v1846_v36 }
 0x669   :  { %v1847_v32 = vadd.f32 %v1831_v47, %v1813_v24 }
 0x66b   :  { %1879 = vxpose.xlu1.b32.cont [14/16] (narrow) %v1863_v3, 8  ;;  %v1865_v13 = vadd.f32 %v3449_v18, %v1847_v32 }
 0x66f   :  { %1880 = vxpose.xlu1.b32.cont [15/16] (narrow) %v1864_v4, 8 }
 0x673   :  { %1881 = vxpose.xlu1.b32.end [16/16] (narrow) %v1865_v13, 8 }
 0x6b3   :  { %v1882_v9 = vpop.trf.xlu1 }
 0x6b4   :  { %1898 = vst [vmem:[%s3687_s5] sm:$0x1] %v1882_v9 }
 0x6b5   :  { %1903 = vsyncpa [#allocation6], 1 }
 0x6b6   :  { %1904 = vsyncpa [#allocation8], 1 }
 0x6b7   :  { %1905 = vsyncpa [#allocation11], 1 }
 0x6b8   :  { %1906 = vsyncpa [#allocation14], 1 }

</bundles_post_ra>
